<compile_context>
chip_gen: v7x
topology: tpu7x:2x2x1
jax: 0.10.0
libtpu: 0.0.40
codegen_flags: <defaults>
</compile_context>

<pallas_src>
import functools

import jax
import jax.numpy as jnp
from jax.experimental import pallas as pl
from jax.experimental.pallas import tpu as pltpu

IN_FEATURES = 768
HIDDEN = 1024
NUM_CLASSES = 32  # stand-in for len(os.listdir(EMBEDS))
BN_EPS = 1e-5


def mlp_kernel(x_ref, w1_ref, bn_ref, w2_ref, b2_ref, o_ref):
    # First linear: bf16 x bf16 on the MXU with f32 accumulation.
    # Linear bias b1 is omitted: it is exactly cancelled by the train-mode
    # BatchNorm batch-mean subtraction that follows.
    h = jnp.dot(
        x_ref[...].astype(jnp.bfloat16),
        w1_ref[...],
        preferred_element_type=jnp.float32,
    )

    # BatchNorm1d (training mode): per-feature batch mean, biased variance (f32).
    mean = jnp.mean(h, axis=0, keepdims=True)
    centered = h - mean
    var = jnp.mean(centered * centered, axis=0, keepdims=True)

    bn = bn_ref[...]            # (2, HIDDEN): row 0 = gamma, row 1 = beta
    gamma = bn[0:1, :]
    beta = bn[1:2, :]
    scale = gamma * jax.lax.rsqrt(var + BN_EPS)   # fold gamma into rsqrt
    h = centered * scale + beta

    # ReLU
    h = jnp.maximum(h, 0.0)

    # Output linear: bf16 x bf16 -> f32 accumulation, add f32 bias.
    out = jnp.dot(
        h.astype(jnp.bfloat16),
        w2_ref[...],
        preferred_element_type=jnp.float32,
    )
    o_ref[...] = out + b2_ref[...]


@functools.partial(jax.jit, static_argnames=())
def mlp_forward(x, w1, b1, gamma, beta, w2, b2):
    # b1 is accepted for API fidelity with the PyTorch module, but it does not
    # affect the output (cancelled by train-mode BN) so it is never sent to HBM.
    del b1

    xb = x.reshape(-1, IN_FEATURES).astype(jnp.float32)
    B = xb.shape[0]

    w1_bf16 = w1.astype(jnp.bfloat16)
    w2_bf16 = w2.astype(jnp.bfloat16)
    bn = jnp.concatenate(
        [gamma.astype(jnp.float32), beta.astype(jnp.float32)], axis=0
    )  # (2, HIDDEN)
    b2f = b2.astype(jnp.float32)

    full = lambda shape: pl.BlockSpec(shape, lambda: (0,) * len(shape))

    flops = 2 * B * IN_FEATURES * HIDDEN + 2 * B * HIDDEN * NUM_CLASSES
    bytes_accessed = (
        xb.size * 4
        + w1_bf16.size * 2
        + bn.size * 4
        + w2_bf16.size * 2
        + b2f.size * 4
        + B * NUM_CLASSES * 4
    )

    return pl.pallas_call(
        mlp_kernel,
        out_shape=jax.ShapeDtypeStruct((B, NUM_CLASSES), jnp.float32),
        grid=(),
        in_specs=[
            full((B, IN_FEATURES)),
            full((IN_FEATURES, HIDDEN)),
            full((2, HIDDEN)),
            full((HIDDEN, NUM_CLASSES)),
            full((1, NUM_CLASSES)),
        ],
        out_specs=full((B, NUM_CLASSES)),
        compiler_params=pltpu.CompilerParams(vmem_limit_bytes=16 << 20),
        cost_estimate=pl.CostEstimate(
            flops=flops, transcendentals=HIDDEN, bytes_accessed=bytes_accessed
        ),
    )(xb, w1_bf16, bn, w2_bf16, b2f)


def init_params(key):
    k1, k2, k3, k4 = jax.random.split(key, 4)
    # PyTorch nn.Linear init: U(-1/sqrt(fan_in), 1/sqrt(fan_in)); deterministic here.
    bound1 = 1.0 / jnp.sqrt(IN_FEATURES)
    bound2 = 1.0 / jnp.sqrt(HIDDEN)
    w1 = jax.random.uniform(k1, (IN_FEATURES, HIDDEN), jnp.float32, -bound1, bound1)
    b1 = jax.random.uniform(k2, (1, HIDDEN), jnp.float32, -bound1, bound1)
    w2 = jax.random.uniform(k3, (HIDDEN, NUM_CLASSES), jnp.float32, -bound2, bound2)
    b2 = jax.random.uniform(k4, (1, NUM_CLASSES), jnp.float32, -bound2, bound2)
    # BatchNorm1d: gamma = 1, beta = 0.
    gamma = jnp.ones((1, HIDDEN), jnp.float32)
    beta = jnp.zeros((1, HIDDEN), jnp.float32)
    return w1, b1, gamma, beta, w2, b2


def reference_forward_matched(x, w1, b1, gamma, beta, w2, b2):
    """Same numerics as the kernel (bf16 MXU inputs, f32 accumulation, no b1)."""
    xb = x.reshape(-1, IN_FEATURES).astype(jnp.float32)
    h = jnp.dot(
        xb.astype(jnp.bfloat16),
        w1.astype(jnp.bfloat16),
        preferred_element_type=jnp.float32,
    )
    mean = jnp.mean(h, axis=0, keepdims=True)
    var = jnp.mean((h - mean) ** 2, axis=0, keepdims=True)
    h = (h - mean) * (gamma * jax.lax.rsqrt(var + BN_EPS)) + beta
    h = jnp.maximum(h, 0.0)
    return (
        jnp.dot(
            h.astype(jnp.bfloat16),
            w2.astype(jnp.bfloat16),
            preferred_element_type=jnp.float32,
        )
        + b2
    )


def reference_forward_f32(x, w1, b1, gamma, beta, w2, b2):
    """Full-f32, PyTorch-faithful reference (includes b1)."""
    xb = x.reshape(-1, IN_FEATURES).astype(jnp.float32)
    h = xb @ w1 + b1
    mean = jnp.mean(h, axis=0, keepdims=True)
    var = jnp.mean((h - mean) ** 2, axis=0, keepdims=True)
    h = (h - mean) / jnp.sqrt(var + BN_EPS) * gamma + beta
    h = jnp.maximum(h, 0.0)
    return h @ w2 + b2


if __name__ == "__main__":
    key = jax.random.PRNGKey(0)
    kx, kp = jax.random.split(key)

    # Small batch of embeddings: (8, 768)
    x = jax.random.normal(kx, (8, IN_FEATURES), jnp.float32)
    params = init_params(kp)

    out = mlp_forward(x, *params)
    out = jax.block_until_ready(out)
    assert out.shape == (8, NUM_CLASSES)

    # Tight check against a reference that uses the same bf16/f32 mixed precision.
    ref_matched = reference_forward_matched(x, *params)
    assert jnp.allclose(out, ref_matched, atol=2e-3, rtol=2e-3), "mismatch vs matched ref"

    # Loose check against the full-f32 PyTorch-faithful reference (bf16 weights
    # introduce ~0.4% relative error at most).
    ref_f32 = reference_forward_f32(x, *params)
    assert jnp.allclose(out, ref_f32, atol=5e-2, rtol=5e-2), "mismatch vs f32 ref"

    print("KERNEL_OK")
</pallas_src>

<mosaic_0001>
module attributes {stable_mosaic.version = 11 : i64} {
  func.func @mlp_kernel(%arg0: memref<8x768xf32, #tpu.memory_space<vmem>>, %arg1: memref<768x1024xbf16, #tpu.memory_space<vmem>>, %arg2: memref<2x1024xf32, #tpu.memory_space<vmem>>, %arg3: memref<1024x32xbf16, #tpu.memory_space<vmem>>, %arg4: memref<1x32xf32, #tpu.memory_space<vmem>>, %arg5: memref<8x32xf32, #tpu.memory_space<vmem>>) attributes {dimension_semantics = [], scalar_prefetch = 0 : i64, scratch_operands = 0 : i64, tpu.core_type = #tpu.core_type<tc>} {
    %c0 = arith.constant 0 : index
    %c0_0 = arith.constant 0 : index
    %0 = vector.load %arg0[%c0, %c0_0] : memref<8x768xf32, #tpu.memory_space<vmem>>, vector<8x768xf32>
    %1 = arith.truncf %0 : vector<8x768xf32> to vector<8x768xbf16>
    %c0_1 = arith.constant 0 : index
    %c0_2 = arith.constant 0 : index
    %2 = vector.load %arg1[%c0_1, %c0_2] : memref<768x1024xbf16, #tpu.memory_space<vmem>>, vector<768x1024xbf16>
    %cst = arith.constant dense<0.000000e+00> : vector<8x1024xf32>
    %3 = tpu.matmul %1, %2, %cst {dimension_numbers = #tpu.dot_dimension_numbers<[1], [0], [0], [1], [0, 0, 1, 1], [], []>} : vector<8x768xbf16>, vector<768x1024xbf16>, vector<8x1024xf32> -> vector<8x1024xf32>
    %cst_3 = arith.constant dense<0.000000e+00> : vector<1024xf32>
    %4 = vector.multi_reduction <add>, %3, %cst_3 [0] : vector<8x1024xf32> to vector<1024xf32>
    %5 = vector.shape_cast %4 : vector<1024xf32> to vector<1x1024xf32>
    %cst_4 = arith.constant 8.000000e+00 : f32
    %6 = vector.broadcast %cst_4 : f32 to vector<1x1024xf32>
    %7 = arith.divf %5, %6 : vector<1x1024xf32>
    %8 = vector.broadcast %7 : vector<1x1024xf32> to vector<8x1024xf32>
    %9 = arith.subf %3, %8 : vector<8x1024xf32>
    %10 = arith.mulf %9, %9 : vector<8x1024xf32>
    %cst_5 = arith.constant dense<0.000000e+00> : vector<1024xf32>
    %11 = vector.multi_reduction <add>, %10, %cst_5 [0] : vector<8x1024xf32> to vector<1024xf32>
    %12 = vector.shape_cast %11 : vector<1024xf32> to vector<1x1024xf32>
    %cst_6 = arith.constant 8.000000e+00 : f32
    %13 = vector.broadcast %cst_6 : f32 to vector<1x1024xf32>
    %14 = arith.divf %12, %13 : vector<1x1024xf32>
    %c0_7 = arith.constant 0 : index
    %c0_8 = arith.constant 0 : index
    %15 = vector.load %arg2[%c0_7, %c0_8] : memref<2x1024xf32, #tpu.memory_space<vmem>>, vector<2x1024xf32>
    %16 = vector.extract_strided_slice %15 {offsets = [0, 0], sizes = [1, 1024], strides = [1, 1]} : vector<2x1024xf32> to vector<1x1024xf32>
    %17 = vector.extract_strided_slice %15 {offsets = [1, 0], sizes = [1, 1024], strides = [1, 1]} : vector<2x1024xf32> to vector<1x1024xf32>
    %cst_9 = arith.constant 9.99999974E-6 : f32
    %18 = vector.broadcast %cst_9 : f32 to vector<1x1024xf32>
    %19 = arith.addf %14, %18 : vector<1x1024xf32>
    %20 = math.rsqrt %19 : vector<1x1024xf32>
    %21 = arith.mulf %16, %20 : vector<1x1024xf32>
    %22 = vector.broadcast %21 : vector<1x1024xf32> to vector<8x1024xf32>
    %23 = arith.mulf %9, %22 : vector<8x1024xf32>
    %24 = vector.broadcast %17 : vector<1x1024xf32> to vector<8x1024xf32>
    %25 = arith.addf %23, %24 : vector<8x1024xf32>
    %cst_10 = arith.constant 0.000000e+00 : f32
    %26 = vector.broadcast %cst_10 : f32 to vector<8x1024xf32>
    %27 = arith.maximumf %25, %26 : vector<8x1024xf32>
    %28 = arith.truncf %27 : vector<8x1024xf32> to vector<8x1024xbf16>
    %c0_11 = arith.constant 0 : index
    %c0_12 = arith.constant 0 : index
    %29 = vector.load %arg3[%c0_11, %c0_12] : memref<1024x32xbf16, #tpu.memory_space<vmem>>, vector<1024x32xbf16>
    %cst_13 = arith.constant dense<0.000000e+00> : vector<8x32xf32>
    %30 = tpu.matmul %28, %29, %cst_13 {dimension_numbers = #tpu.dot_dimension_numbers<[1], [0], [0], [1], [0, 0, 1, 1], [], []>} : vector<8x1024xbf16>, vector<1024x32xbf16>, vector<8x32xf32> -> vector<8x32xf32>
    %c0_14 = arith.constant 0 : index
    %c0_15 = arith.constant 0 : index
    %31 = vector.load %arg4[%c0_14, %c0_15] : memref<1x32xf32, #tpu.memory_space<vmem>>, vector<1x32xf32>
    %32 = vector.broadcast %31 : vector<1x32xf32> to vector<8x32xf32>
    %33 = arith.addf %30, %32 : vector<8x32xf32>
    %c0_16 = arith.constant 0 : index
    %c0_17 = arith.constant 0 : index
    %34 = vector.load %arg5[%c0_16, %c0_17] : memref<8x32xf32, #tpu.memory_space<vmem>>, vector<8x32xf32>
    tpu.vector_store %arg5[%c0_16, %c0_17], %33 {strides = array<i32>} : memref<8x32xf32, #tpu.memory_space<vmem>>, vector<8x32xf32>,
    return
  }
}

</mosaic_0001>

<bundles_post_ra>
// kernel: mlp_forward.1
= control target key start
LH: loop header
LB: loop body
LE: loop exit
PB: predicated region body
PF: predicated region fallthrough
CT: control target
= control target key end

     0   :  { %s6129_s0 = inlined_call_operand.vmem [shape: f32[8,768], index: 0, kind: input, shape index: {}]   ;;  %s6130_s1 = inlined_call_operand.vmem [shape: bf16[768,1024], index: 1, kind: input, shape index: {}]   ;;  %s6131_s2 = inlined_call_operand.vmem [shape: f32[2,1024], index: 2, kind: input, shape index: {}]   ;;  %s6132_s3 = inlined_call_operand.vmem [shape: bf16[1024,32], index: 3, kind: input, shape index: {}]   ;;  %s6133_s4 = inlined_call_operand.vmem [shape: f32[1,32], index: 4, kind: input, shape index: {}]   ;;  %s6134_s5 = inlined_call_operand.hbm [shape: f32[8,32], index: 5, kind: output, shape index: {}]  }
   0x1   :  { %v34_v0 = vld [vmem:[%s6130_s1] sm:$0xff]  ;;  %v35_v2 = vld [vmem:[%s6130_s1 + $0x8] sm:$0xff] }
   0x2   :  { %v38_v1 = vld [vmem:[%s6130_s1 + $0x20] sm:$0xff]  ;;  %v39_v4 = vld [vmem:[%s6130_s1 + $0x28] sm:$0xff] }
   0x3   :  { %v3899_v3 = vcombine.high %v34_v0, %v38_v1  ;;  %v3898_v5 = vcombine.low %v34_v0, %v38_v1  ;;  %v42_v6 = vld [vmem:[%s6130_s1 + $0x40] sm:$0xff]  ;;  %v3901_v8 = vcombine.high %v35_v2, %v39_v4  ;;  %v3900_v9 = vcombine.low %v35_v2, %v39_v4  ;;  %v43_v11 = vld [vmem:[%s6130_s1 + $0x48] sm:$0xff] }
   0x4   :  { %v46_v7 = vld [vmem:[%s6130_s1 + $0x60] sm:$0xff]  ;;  %v47_v12 = vld [vmem:[%s6130_s1 + $0x68] sm:$0xff] }
   0x5   :  { %v3907_v10 = vcombine.high %v42_v6, %v46_v7  ;;  %v50_v13 = vld [vmem:[%s6130_s1 + $0x80] sm:$0xff]  ;;  %2338 = vmatprep.subr.bf16.mxu0 %v3899_v3  ;;  %v3909_v14 = vcombine.high %v43_v11, %v47_v12  ;;  %v51_v16 = vld [vmem:[%s6130_s1 + $0x88] sm:$0xff]  ;;  %2461 = vmatprep.subr.bf16.mxu1 %v3901_v8  ;;  %v3906_v18 = vcombine.low %v42_v6, %v46_v7 }
   0x6   :  { %v54_v15 = vld [vmem:[%s6130_s1 + $0xa0] sm:$0xff]  ;;  %v55_v17 = vld [vmem:[%s6130_s1 + $0xa8] sm:$0xff]  ;;  %2339 = vmatpush1.bf16.msra.mxu0 %v3898_v5  ;;  %2462 = vmatpush1.bf16.msra.mxu1 %v3900_v9  ;;  %v3908_v19 = vcombine.low %v43_v11, %v47_v12 }
   0x7   :  { %2340 = vmatprep.subr.bf16.mxu0 %v3907_v10  ;;  %v3915_v20 = vcombine.high %v50_v13, %v54_v15  ;;  %2463 = vmatprep.subr.bf16.mxu1 %v3909_v14  ;;  %v3917_v21 = vcombine.high %v51_v16, %v55_v17  ;;  %v58_v22 = vld [vmem:[%s6130_s1 + $0xc0] sm:$0xff]  ;;  %v59_v24 = vld [vmem:[%s6130_s1 + $0xc8] sm:$0xff]  ;;  %v3914_v26 = vcombine.low %v50_v13, %v54_v15 }
   0x8   :  { %v62_v23 = vld [vmem:[%s6130_s1 + $0xe0] sm:$0xff]  ;;  %v63_v25 = vld [vmem:[%s6130_s1 + $0xe8] sm:$0xff]  ;;  %v3916_v27 = vcombine.low %v51_v16, %v55_v17 }
   0x9   :  { %v3923_v28 = vcombine.high %v58_v22, %v62_v23  ;;  %v3925_v29 = vcombine.high %v59_v24, %v63_v25  ;;  %v66_v30 = vld [vmem:[%s6130_s1 + $0x100] sm:$0xff]  ;;  %v67_v32 = vld [vmem:[%s6130_s1 + $0x108] sm:$0xff]  ;;  %v3922_v34 = vcombine.low %v58_v22, %v62_v23  ;;  %v3924_v35 = vcombine.low %v59_v24, %v63_v25 }
   0xa   :  { %2341 = vmatpush1.bf16.msra.mxu0 %v3906_v18  ;;  %2464 = vmatpush1.bf16.msra.mxu1 %v3908_v19  ;;  %v70_v31 = vld [vmem:[%s6130_s1 + $0x120] sm:$0xff]  ;;  %v71_v33 = vld [vmem:[%s6130_s1 + $0x128] sm:$0xff] }
   0xb   :  { %2342 = vmatprep.subr.bf16.mxu0 %v3915_v20  ;;  %2465 = vmatprep.subr.bf16.mxu1 %v3917_v21  ;;  %v3931_v36 = vcombine.high %v66_v30, %v70_v31  ;;  %v3933_v37 = vcombine.high %v67_v32, %v71_v33  ;;  %v74_v38 = vld [vmem:[%s6130_s1 + $0x140] sm:$0xff]  ;;  %v75_v40 = vld [vmem:[%s6130_s1 + $0x148] sm:$0xff]  ;;  %v3930_v42 = vcombine.low %v66_v30, %v70_v31 }
   0xc   :  { %v78_v39 = vld [vmem:[%s6130_s1 + $0x160] sm:$0xff]  ;;  %v79_v41 = vld [vmem:[%s6130_s1 + $0x168] sm:$0xff]  ;;  %v3932_v43 = vcombine.low %v67_v32, %v71_v33 }
   0xd   :  { %v3939_v44 = vcombine.high %v74_v38, %v78_v39  ;;  %v3941_v45 = vcombine.high %v75_v40, %v79_v41  ;;  %v82_v46 = vld [vmem:[%s6130_s1 + $0x180] sm:$0xff]  ;;  %v83_v48 = vld [vmem:[%s6130_s1 + $0x188] sm:$0xff]  ;;  %v3938_v50 = vcombine.low %v74_v38, %v78_v39  ;;  %v3940_v51 = vcombine.low %v75_v40, %v79_v41 }
   0xe   :  { %2343 = vmatpush1.bf16.msra.mxu0 %v3914_v26  ;;  %2466 = vmatpush1.bf16.msra.mxu1 %v3916_v27  ;;  %v86_v47 = vld [vmem:[%s6130_s1 + $0x1a0] sm:$0xff]  ;;  %v87_v49 = vld [vmem:[%s6130_s1 + $0x1a8] sm:$0xff] }
   0xf   :  { %2344 = vmatprep.subr.bf16.mxu0 %v3923_v28  ;;  %2467 = vmatprep.subr.bf16.mxu1 %v3925_v29  ;;  %v3947_v52 = vcombine.high %v82_v46, %v86_v47  ;;  %v23_v53 = vld [vmem:[%s6129_s0 + $0x8] sm:$0xff]  ;;  %v3949_v54 = vcombine.high %v83_v48, %v87_v49  ;;  %v90_v55 = vld [vmem:[%s6130_s1 + $0x1c0] sm:$0xff]  ;;  %v3946_v60 = vcombine.low %v82_v46, %v86_v47 }
  0x10   :  { %v94_v56 = vld [vmem:[%s6130_s1 + $0x1e0] sm:$0xff]  ;;  %v4698_v57 = vpack.c.bf16 %v23_v53, %v23_v53  ;;  %v91_v58 = vld [vmem:[%s6130_s1 + $0x1c8] sm:$0xff]  ;;  %v3948_v61 = vcombine.low %v83_v48, %v87_v49 }
  0x11   :  { %v95_v59 = vld [vmem:[%s6130_s1 + $0x1e8] sm:$0xff]  ;;  %v3955_v62 = vcombine.high %v90_v55, %v94_v56  ;;  %v98_v0 = vld [vmem:[%s6130_s1 + $0x200] sm:$0xff]  ;;  %v3954_v4 = vcombine.low %v90_v55, %v94_v56 }
  0x12   :  { %2345 = vmatpush1.bf16.msra.mxu0 %v3922_v34  ;;  %2468 = vmatpush1.bf16.msra.mxu1 %v3924_v35  ;;  %v3957_v63 = vcombine.high %v91_v58, %v95_v59  ;;  %v102_v1 = vld [vmem:[%s6130_s1 + $0x220] sm:$0xff]  ;;  %v99_v2 = vld [vmem:[%s6130_s1 + $0x208] sm:$0xff]  ;;  %v3956_v5 = vcombine.low %v91_v58, %v95_v59 }
  0x13   :  { %2346 = vmatprep.subr.bf16.mxu0 %v3931_v36  ;;  %2469 = vmatprep.subr.bf16.mxu1 %v3933_v37  ;;  %v103_v3 = vld [vmem:[%s6130_s1 + $0x228] sm:$0xff]  ;;  %v3963_v6 = vcombine.high %v98_v0, %v102_v1  ;;  %v106_v8 = vld [vmem:[%s6130_s1 + $0x240] sm:$0xff]  ;;  %v3962_v12 = vcombine.low %v98_v0, %v102_v1 }
  0x14   :  { %2370 = vmatprep.mubr.bf16.mxu0 %v4698_v57  ;;  %2493 = vmatprep.mubr.bf16.mxu1 %v4698_v57  ;;  %v3965_v7 = vcombine.high %v99_v2, %v103_v3  ;;  %v110_v9 = vld [vmem:[%s6130_s1 + $0x260] sm:$0xff]  ;;  %v107_v10 = vld [vmem:[%s6130_s1 + $0x248] sm:$0xff]  ;;  %v3964_v13 = vcombine.low %v99_v2, %v103_v3 }
  0x15   :  { %v111_v11 = vld [vmem:[%s6130_s1 + $0x268] sm:$0xff]  ;;  %v3971_v14 = vcombine.high %v106_v8, %v110_v9  ;;  %v114_v16 = vld [vmem:[%s6130_s1 + $0x280] sm:$0xff]  ;;  %v3970_v20 = vcombine.low %v106_v8, %v110_v9 }
  0x16   :  { %2347 = vmatpush1.bf16.msra.mxu0 %v3930_v42  ;;  %2470 = vmatpush1.bf16.msra.mxu1 %v3932_v43  ;;  %v3973_v15 = vcombine.high %v107_v10, %v111_v11  ;;  %v118_v17 = vld [vmem:[%s6130_s1 + $0x2a0] sm:$0xff]  ;;  %v115_v18 = vld [vmem:[%s6130_s1 + $0x288] sm:$0xff]  ;;  %v3972_v21 = vcombine.low %v107_v10, %v111_v11 }
  0x17   :  { %2348 = vmatprep.subr.bf16.mxu0 %v3939_v44  ;;  %2471 = vmatprep.subr.bf16.mxu1 %v3941_v45  ;;  %v119_v19 = vld [vmem:[%s6130_s1 + $0x2a8] sm:$0xff]  ;;  %v3979_v22 = vcombine.high %v114_v16, %v118_v17  ;;  %v122_v24 = vld [vmem:[%s6130_s1 + $0x2c0] sm:$0xff]  ;;  %v3978_v28 = vcombine.low %v114_v16, %v118_v17 }
  0x18   :  { %v3981_v23 = vcombine.high %v115_v18, %v119_v19  ;;  %v126_v25 = vld [vmem:[%s6130_s1 + $0x2e0] sm:$0xff]  ;;  %v123_v26 = vld [vmem:[%s6130_s1 + $0x2c8] sm:$0xff]  ;;  %v3980_v29 = vcombine.low %v115_v18, %v119_v19 }
  0x19   :  { %v127_v27 = vld [vmem:[%s6130_s1 + $0x2e8] sm:$0xff]  ;;  %v3987_v30 = vcombine.high %v122_v24, %v126_v25  ;;  %v130_v32 = vld [vmem:[%s6130_s1 + $0x300] sm:$0xff]  ;;  %v3986_v36 = vcombine.low %v122_v24, %v126_v25 }
  0x1a   :  { %2349 = vmatpush1.bf16.msra.mxu0 %v3938_v50  ;;  %2472 = vmatpush1.bf16.msra.mxu1 %v3940_v51  ;;  %v3989_v31 = vcombine.high %v123_v26, %v127_v27  ;;  %v134_v33 = vld [vmem:[%s6130_s1 + $0x320] sm:$0xff]  ;;  %v131_v34 = vld [vmem:[%s6130_s1 + $0x308] sm:$0xff]  ;;  %v3988_v37 = vcombine.low %v123_v26, %v127_v27 }
  0x1b   :  { %2350 = vmatprep.subr.bf16.mxu0 %v3947_v52  ;;  %2473 = vmatprep.subr.bf16.mxu1 %v3949_v54  ;;  %v135_v35 = vld [vmem:[%s6130_s1 + $0x328] sm:$0xff]  ;;  %v3995_v38 = vcombine.high %v130_v32, %v134_v33  ;;  %v138_v40 = vld [vmem:[%s6130_s1 + $0x340] sm:$0xff]  ;;  %v3994_v44 = vcombine.low %v130_v32, %v134_v33 }
  0x1c   :  { %v3997_v39 = vcombine.high %v131_v34, %v135_v35  ;;  %v142_v41 = vld [vmem:[%s6130_s1 + $0x360] sm:$0xff]  ;;  %v139_v42 = vld [vmem:[%s6130_s1 + $0x348] sm:$0xff]  ;;  %v3996_v45 = vcombine.low %v131_v34, %v135_v35 }
  0x1d   :  { %v143_v43 = vld [vmem:[%s6130_s1 + $0x368] sm:$0xff]  ;;  %v4003_v46 = vcombine.high %v138_v40, %v142_v41  ;;  %v146_v48 = vld [vmem:[%s6130_s1 + $0x380] sm:$0xff]  ;;  %v4002_v52 = vcombine.low %v138_v40, %v142_v41 }
  0x1e   :  { %2351 = vmatpush1.bf16.msra.mxu0 %v3946_v60  ;;  %2474 = vmatpush1.bf16.msra.mxu1 %v3948_v61  ;;  %v4005_v47 = vcombine.high %v139_v42, %v143_v43  ;;  %v150_v49 = vld [vmem:[%s6130_s1 + $0x3a0] sm:$0xff]  ;;  %v147_v50 = vld [vmem:[%s6130_s1 + $0x388] sm:$0xff]  ;;  %v4004_v53 = vcombine.low %v139_v42, %v143_v43 }
  0x1f   :  { %2352 = vmatprep.subr.bf16.mxu0 %v3955_v62  ;;  %2475 = vmatprep.subr.bf16.mxu1 %v3957_v63  ;;  %v151_v51 = vld [vmem:[%s6130_s1 + $0x3a8] sm:$0xff]  ;;  %v4011_v54 = vcombine.high %v146_v48, %v150_v49  ;;  %v154_v56 = vld [vmem:[%s6130_s1 + $0x3c0] sm:$0xff]  ;;  %v4010_v61 = vcombine.low %v146_v48, %v150_v49 }
  0x20   :  { %v4013_v55 = vcombine.high %v147_v50, %v151_v51  ;;  %v158_v58 = vld [vmem:[%s6130_s1 + $0x3e0] sm:$0xff]  ;;  %v155_v59 = vld [vmem:[%s6130_s1 + $0x3c8] sm:$0xff]  ;;  %v4012_v62 = vcombine.low %v147_v50, %v151_v51 }
  0x21   :  { %v159_v60 = vld [vmem:[%s6130_s1 + $0x3e8] sm:$0xff]  ;;  %v4019_v63 = vcombine.high %v154_v56, %v158_v58  ;;  %v162_v1 = vld [vmem:[%s6130_s1 + $0x400] sm:$0xff] }
  0x22   :  { %2353 = vmatpush1.bf16.msra.mxu0 %v3954_v4  ;;  %2476 = vmatpush1.bf16.msra.mxu1 %v3956_v5  ;;  %v4021_v0 = vcombine.high %v155_v59, %v159_v60  ;;  %v166_v2 = vld [vmem:[%s6130_s1 + $0x420] sm:$0xff]  ;;  %v163_v3 = vld [vmem:[%s6130_s1 + $0x408] sm:$0xff]  ;;  %v4018_v5 = vcombine.low %v154_v56, %v158_v58 }
  0x23   :  { %2354 = vmatprep.subr.bf16.mxu0 %v3963_v6  ;;  %2477 = vmatprep.subr.bf16.mxu1 %v3965_v7  ;;  %v167_v4 = vld [vmem:[%s6130_s1 + $0x428] sm:$0xff]  ;;  %v22_v6 = vld [vmem:[%s6129_s0] sm:$0xff]  ;;  %v4020_v7 = vcombine.low %v155_v59, %v159_v60  ;;  %v4027_v8 = vcombine.high %v162_v1, %v166_v2  ;;  %v4026_v16 = vcombine.low %v162_v1, %v166_v2 }
  0x24   :  { %v4029_v9 = vcombine.high %v163_v3, %v167_v4  ;;  %v170_v10 = vld [vmem:[%s6130_s1 + $0x440] sm:$0xff]  ;;  %v4028_v17 = vcombine.low %v163_v3, %v167_v4  ;;  %v183_v24 = vld [vmem:[%s6130_s1 + $0x4a8] sm:$0xff] }
  0x25   :  { %v174_v11 = vld [vmem:[%s6130_s1 + $0x460] sm:$0xff]  ;;  %v191_v32 = vld [vmem:[%s6130_s1 + $0x4e8] sm:$0xff] }
  0x26   :  { %2355 = vmatpush1.bf16.msra.mxu0 %v3962_v12  ;;  %2478 = vmatpush1.bf16.msra.mxu1 %v3964_v13  ;;  %v4825_v12 = vpack.c.bf16 %v22_v6, %v22_v6  ;;  %v171_v13 = vld [vmem:[%s6130_s1 + $0x448] sm:$0xff]  ;;  %v4035_v18 = vcombine.high %v170_v10, %v174_v11  ;;  %v4034_v25 = vcombine.low %v170_v10, %v174_v11  ;;  %v230_v6 = vld [vmem:[%s6130_s1 + $0x620] sm:$0xff] }
  0x27   :  { %2356 = vmatprep.subr.bf16.mxu0 %v3971_v14  ;;  %2479 = vmatprep.subr.bf16.mxu1 %v3973_v15  ;;  %v175_v14 = vld [vmem:[%s6130_s1 + $0x468] sm:$0xff]  ;;  %v25_v15 = vld [vmem:[%s6129_s0 + $0x18] sm:$0xff] }
  0x28   :  { %v4037_v19 = vcombine.high %v171_v13, %v175_v14  ;;  %v4036_v26 = vcombine.low %v171_v13, %v175_v14  ;;  %v199_v40 = vld [vmem:[%s6130_s1 + $0x528] sm:$0xff]  ;;  %v234_v14 = vld [vmem:[%s6130_s1 + $0x640] sm:$0xff] }
  0x29   :  { %v207_v48 = vld [vmem:[%s6130_s1 + $0x568] sm:$0xff] }
  0x2a   :  { %2357 = vmatpush1.bf16.msra.mxu0 %v3970_v20  ;;  %2480 = vmatpush1.bf16.msra.mxu1 %v3972_v21  ;;  %v178_v20 = vld [vmem:[%s6130_s1 + $0x480] sm:$0xff]  ;;  %v215_v56 = vld [vmem:[%s6130_s1 + $0x5a8] sm:$0xff] }
  0x2b   :  { %2358 = vmatprep.subr.bf16.mxu0 %v3979_v22  ;;  %2481 = vmatprep.subr.bf16.mxu1 %v3981_v23  ;;  %v182_v21 = vld [vmem:[%s6130_s1 + $0x4a0] sm:$0xff]  ;;  %v179_v22 = vld [vmem:[%s6130_s1 + $0x488] sm:$0xff]  ;;  %v4845_v23 = vpack.c.bf16 %v25_v15, %v25_v15 }
  0x2c   :  { %v4043_v27 = vcombine.high %v178_v20, %v182_v21  ;;  %v4042_v33 = vcombine.low %v178_v20, %v182_v21  ;;  %v4044_v34 = vcombine.low %v179_v22, %v183_v24  ;;  %v223_v1 = vld [vmem:[%s6130_s1 + $0x5e8] sm:$0xff]  ;;  %v238_v15 = vld [vmem:[%s6130_s1 + $0x660] sm:$0xff] }
  0x2d   :  { %v4099_v21 = vcombine.high %v234_v14, %v238_v15 }
  0x2e   :  { %2359 = vmatpush1.bf16.msra.mxu0 %v3978_v28  ;;  %2482 = vmatpush1.bf16.msra.mxu1 %v3980_v29  ;;  %v186_v28 = vld [vmem:[%s6130_s1 + $0x4c0] sm:$0xff] }
  0x2f   :  { %2360 = vmatprep.subr.bf16.mxu0 %v3987_v30  ;;  %2483 = vmatprep.subr.bf16.mxu1 %v3989_v31  ;;  %v190_v29 = vld [vmem:[%s6130_s1 + $0x4e0] sm:$0xff]  ;;  %v187_v30 = vld [vmem:[%s6130_s1 + $0x4c8] sm:$0xff]  ;;  %v4045_v31 = vcombine.high %v179_v22, %v183_v24 }
  0x30   :  { %v4051_v35 = vcombine.high %v186_v28, %v190_v29  ;;  %v4050_v41 = vcombine.low %v186_v28, %v190_v29  ;;  %v4052_v42 = vcombine.low %v187_v30, %v191_v32  ;;  %v242_v22 = vld [vmem:[%s6130_s1 + $0x680] sm:$0xff]  ;;  %v4098_v28 = vcombine.low %v234_v14, %v238_v15  ;;  %v24_v14 = vld [vmem:[%s6129_s0 + $0x10] sm:$0xff] }
  0x31   :  { %v246_v24 = vld [vmem:[%s6130_s1 + $0x6a0] sm:$0xff] }
  0x32   :  { %2361 = vmatpush1.bf16.msra.mxu0 %v3986_v36  ;;  %2484 = vmatpush1.bf16.msra.mxu1 %v3988_v37  ;;  %v194_v36 = vld [vmem:[%s6130_s1 + $0x500] sm:$0xff] }
  0x33   :  { %2362 = vmatprep.subr.bf16.mxu0 %v3995_v38  ;;  %2485 = vmatprep.subr.bf16.mxu1 %v3997_v39  ;;  %v198_v37 = vld [vmem:[%s6130_s1 + $0x520] sm:$0xff]  ;;  %v195_v38 = vld [vmem:[%s6130_s1 + $0x508] sm:$0xff]  ;;  %v4053_v39 = vcombine.high %v187_v30, %v191_v32  ;;  %v4107_v30 = vcombine.high %v242_v22, %v246_v24 }
  0x34   :  { %v4059_v43 = vcombine.high %v194_v36, %v198_v37  ;;  %v4058_v49 = vcombine.low %v194_v36, %v198_v37  ;;  %v4060_v50 = vcombine.low %v195_v38, %v199_v40  ;;  %v254_v32 = vld [vmem:[%s6130_s1 + $0x6e0] sm:$0xff]  ;;  %v4106_v36 = vcombine.low %v242_v22, %v246_v24  ;;  %v27_v24 = vld [vmem:[%s6129_s0 + $0x28] sm:$0xff] }
  0x36   :  { %2363 = vmatpush1.bf16.msra.mxu0 %v3994_v44  ;;  %2486 = vmatpush1.bf16.msra.mxu1 %v3996_v45  ;;  %v202_v44 = vld [vmem:[%s6130_s1 + $0x540] sm:$0xff] }
  0x37   :  { %2364 = vmatprep.subr.bf16.mxu0 %v4003_v46  ;;  %2487 = vmatprep.subr.bf16.mxu1 %v4005_v47  ;;  %v206_v45 = vld [vmem:[%s6130_s1 + $0x560] sm:$0xff]  ;;  %v203_v46 = vld [vmem:[%s6130_s1 + $0x548] sm:$0xff]  ;;  %v4061_v47 = vcombine.high %v195_v38, %v199_v40 }
  0x38   :  { %v4067_v51 = vcombine.high %v202_v44, %v206_v45  ;;  %v4066_v58 = vcombine.low %v202_v44, %v206_v45  ;;  %v4068_v59 = vcombine.low %v203_v46, %v207_v48  ;;  %v262_v40 = vld [vmem:[%s6130_s1 + $0x720] sm:$0xff] }
  0x3a   :  { %2365 = vmatpush1.bf16.msra.mxu0 %v4002_v52  ;;  %2488 = vmatpush1.bf16.msra.mxu1 %v4004_v53  ;;  %v210_v52 = vld [vmem:[%s6130_s1 + $0x580] sm:$0xff] }
  0x3b   :  { %2366 = vmatprep.subr.bf16.mxu0 %v4011_v54  ;;  %2489 = vmatprep.subr.bf16.mxu1 %v4013_v55  ;;  %v214_v53 = vld [vmem:[%s6130_s1 + $0x5a0] sm:$0xff]  ;;  %v211_v54 = vld [vmem:[%s6130_s1 + $0x588] sm:$0xff]  ;;  %v4069_v55 = vcombine.high %v203_v46, %v207_v48 }
  0x3c   :  { %v4075_v60 = vcombine.high %v210_v52, %v214_v53  ;;  %v4074_v2 = vcombine.low %v210_v52, %v214_v53  ;;  %v4076_v3 = vcombine.low %v211_v54, %v215_v56  ;;  %v270_v48 = vld [vmem:[%s6130_s1 + $0x760] sm:$0xff] }
  0x3e   :  { %2367 = vmatpush1.bf16.msra.mxu0 %v4010_v61  ;;  %2490 = vmatpush1.bf16.msra.mxu1 %v4012_v62  ;;  %v218_v61 = vld [vmem:[%s6130_s1 + $0x5c0] sm:$0xff] }
  0x3f   :  { %2368 = vmatprep.subr.bf16.mxu0 %v4019_v63  ;;  %2491 = vmatprep.subr.bf16.mxu1 %v4021_v0  ;;  %v222_v62 = vld [vmem:[%s6130_s1 + $0x5e0] sm:$0xff]  ;;  %v219_v63 = vld [vmem:[%s6130_s1 + $0x5c8] sm:$0xff]  ;;  %v4077_v0 = vcombine.high %v211_v54, %v215_v56 }
  0x40   :  { %v4083_v4 = vcombine.high %v218_v61, %v222_v62  ;;  %v4082_v10 = vcombine.low %v218_v61, %v222_v62  ;;  %v4084_v11 = vcombine.low %v219_v63, %v223_v1  ;;  %v278_v56 = vld [vmem:[%s6130_s1 + $0x7a0] sm:$0xff] }
  0x42   :  { %2369 = vmatpush1.bf16.msra.mxu0 %v4018_v5  ;;  %2492 = vmatpush1.bf16.msra.mxu1 %v4020_v7  ;;  %v226_v5 = vld [vmem:[%s6130_s1 + $0x600] sm:$0xff]  ;;  %v227_v7 = vld [vmem:[%s6130_s1 + $0x608] sm:$0xff] }
  0x43   :  { %2379 = vmatprep.subr.bf16.mxu0 %v4027_v8  ;;  %2502 = vmatprep.subr.bf16.mxu1 %v4029_v9  ;;  %v4085_v8 = vcombine.high %v219_v63, %v223_v1  ;;  %v231_v9 = vld [vmem:[%s6130_s1 + $0x628] sm:$0xff]  ;;  %v4091_v13 = vcombine.high %v226_v5, %v230_v6  ;;  %v286_v1 = vld [vmem:[%s6130_s1 + $0x7e0] sm:$0xff] }
  0x44   :  { %v4092_v20 = vcombine.low %v227_v7, %v231_v9 }
  0x45   :  { %2371 = vmatmul.mubr.bf16.vlgmr.msra.gmra.mrb[0].mxu0 %v4825_v12  ;;  %2494 = vmatmul.mubr.bf16.vlgmr.msra.gmra.mrb[0].mxu1 %v4825_v12 }
  0x46   :  { %2380 = vmatpush1.bf16.msra.mxu0 %v4026_v16  ;;  %2503 = vmatpush1.bf16.msra.mxu1 %v4028_v17  ;;  %v235_v16 = vld [vmem:[%s6130_s1 + $0x648] sm:$0xff]  ;;  %v4093_v17 = vcombine.high %v227_v7, %v231_v9  ;;  %v294_v9 = vld [vmem:[%s6130_s1 + $0x820] sm:$0xff] }
  0x47   :  { %2381 = vmatprep.subr.bf16.mxu0 %v4035_v18  ;;  %2504 = vmatprep.subr.bf16.mxu1 %v4037_v19  ;;  %v239_v18 = vld [vmem:[%s6130_s1 + $0x668] sm:$0xff]  ;;  %v4090_v19 = vcombine.low %v226_v5, %v230_v6  ;;  %v290_v6 = vld [vmem:[%s6130_s1 + $0x800] sm:$0xff] }
  0x48   :  { %2411 = vmatprep.mubr.bf16.mxu0 %v4845_v23  ;;  %2534 = vmatprep.mubr.bf16.mxu1 %v4845_v23  ;;  %v4100_v29 = vcombine.low %v235_v16, %v239_v18 }
  0x4a   :  { %2382 = vmatpush1.bf16.msra.mxu0 %v4034_v25  ;;  %2505 = vmatpush1.bf16.msra.mxu1 %v4036_v26  ;;  %v243_v25 = vld [vmem:[%s6130_s1 + $0x688] sm:$0xff]  ;;  %v4101_v26 = vcombine.high %v235_v16, %v239_v18  ;;  %v298_v16 = vld [vmem:[%s6130_s1 + $0x840] sm:$0xff]  ;;  %v4155_v18 = vcombine.high %v290_v6, %v294_v9 }
  0x4b   :  { %2383 = vmatprep.subr.bf16.mxu0 %v4043_v27  ;;  %2506 = vmatprep.subr.bf16.mxu1 %v4045_v31  ;;  %v247_v27 = vld [vmem:[%s6130_s1 + $0x6a8] sm:$0xff]  ;;  %v250_v31 = vld [vmem:[%s6130_s1 + $0x6c0] sm:$0xff] }
  0x4c   :  { %v4108_v37 = vcombine.low %v243_v25, %v247_v27  ;;  %v4115_v38 = vcombine.high %v250_v31, %v254_v32  ;;  %v4114_v44 = vcombine.low %v250_v31, %v254_v32  ;;  %v307_v32 = vld [vmem:[%s6130_s1 + $0x888] sm:$0xff] }
  0x4e   :  { %2384 = vmatpush1.bf16.msra.mxu0 %v4042_v33  ;;  %2507 = vmatpush1.bf16.msra.mxu1 %v4044_v34  ;;  %v251_v33 = vld [vmem:[%s6130_s1 + $0x6c8] sm:$0xff]  ;;  %v4109_v34 = vcombine.high %v243_v25, %v247_v27  ;;  %v5040_v25 = vpack.c.bf16 %v24_v14, %v24_v14 }
  0x4f   :  { %2385 = vmatprep.subr.bf16.mxu0 %v4051_v35  ;;  %2508 = vmatprep.subr.bf16.mxu1 %v4053_v39  ;;  %v255_v35 = vld [vmem:[%s6130_s1 + $0x6e8] sm:$0xff]  ;;  %v258_v39 = vld [vmem:[%s6130_s1 + $0x700] sm:$0xff] }
  0x50   :  { %v4116_v45 = vcombine.low %v251_v33, %v255_v35  ;;  %v4123_v46 = vcombine.high %v258_v39, %v262_v40  ;;  %v4122_v52 = vcombine.low %v258_v39, %v262_v40 }
  0x52   :  { %2386 = vmatpush1.bf16.msra.mxu0 %v4050_v41  ;;  %2509 = vmatpush1.bf16.msra.mxu1 %v4052_v42  ;;  %v259_v41 = vld [vmem:[%s6130_s1 + $0x708] sm:$0xff]  ;;  %v4117_v42 = vcombine.high %v251_v33, %v255_v35  ;;  %v5051_v33 = vpack.c.bf16 %v27_v24, %v27_v24 }
  0x53   :  { %2387 = vmatprep.subr.bf16.mxu0 %v4059_v43  ;;  %2510 = vmatprep.subr.bf16.mxu1 %v4061_v47  ;;  %v263_v43 = vld [vmem:[%s6130_s1 + $0x728] sm:$0xff]  ;;  %v266_v47 = vld [vmem:[%s6130_s1 + $0x740] sm:$0xff] }
  0x54   :  { %v4124_v53 = vcombine.low %v259_v41, %v263_v43  ;;  %v4131_v54 = vcombine.high %v266_v47, %v270_v48  ;;  %v4130_v61 = vcombine.low %v266_v47, %v270_v48 }
  0x56   :  { %2388 = vmatpush1.bf16.msra.mxu0 %v4058_v49  ;;  %2511 = vmatpush1.bf16.msra.mxu1 %v4060_v50  ;;  %v267_v49 = vld [vmem:[%s6130_s1 + $0x748] sm:$0xff]  ;;  %v4125_v50 = vcombine.high %v259_v41, %v263_v43 }
  0x57   :  { %2389 = vmatprep.subr.bf16.mxu0 %v4067_v51  ;;  %2512 = vmatprep.subr.bf16.mxu1 %v4069_v55  ;;  %v271_v51 = vld [vmem:[%s6130_s1 + $0x768] sm:$0xff]  ;;  %v274_v55 = vld [vmem:[%s6130_s1 + $0x780] sm:$0xff] }
  0x58   :  { %v4132_v62 = vcombine.low %v267_v49, %v271_v51  ;;  %v4139_v63 = vcombine.high %v274_v55, %v278_v56  ;;  %v4138_v5 = vcombine.low %v274_v55, %v278_v56 }
  0x5a   :  { %2390 = vmatpush1.bf16.msra.mxu0 %v4066_v58  ;;  %2513 = vmatpush1.bf16.msra.mxu1 %v4068_v59  ;;  %v275_v58 = vld [vmem:[%s6130_s1 + $0x788] sm:$0xff]  ;;  %v4133_v59 = vcombine.high %v267_v49, %v271_v51 }
  0x5b   :  { %2391 = vmatprep.subr.bf16.mxu0 %v4075_v60  ;;  %2514 = vmatprep.subr.bf16.mxu1 %v4077_v0  ;;  %v279_v60 = vld [vmem:[%s6130_s1 + $0x7a8] sm:$0xff]  ;;  %v282_v0 = vld [vmem:[%s6130_s1 + $0x7c0] sm:$0xff] }
  0x5c   :  { %v4140_v7 = vcombine.low %v275_v58, %v279_v60  ;;  %v4146_v15 = vcombine.low %v282_v0, %v286_v1 }
  0x5e   :  { %2392 = vmatpush1.bf16.msra.mxu0 %v4074_v2  ;;  %2515 = vmatpush1.bf16.msra.mxu1 %v4076_v3  ;;  %v283_v2 = vld [vmem:[%s6130_s1 + $0x7c8] sm:$0xff]  ;;  %v4141_v3 = vcombine.high %v275_v58, %v279_v60 }
  0x5f   :  { %2393 = vmatprep.subr.bf16.mxu0 %v4083_v4  ;;  %2516 = vmatprep.subr.bf16.mxu1 %v4085_v8  ;;  %v287_v4 = vld [vmem:[%s6130_s1 + $0x7e8] sm:$0xff]  ;;  %v4147_v8 = vcombine.high %v282_v0, %v286_v1 }
  0x62   :  { %2394 = vmatpush1.bf16.msra.mxu0 %v4082_v10  ;;  %2517 = vmatpush1.bf16.msra.mxu1 %v4084_v11  ;;  %v291_v10 = vld [vmem:[%s6130_s1 + $0x808] sm:$0xff] }
  0x63   :  { %2395 = vmatprep.subr.bf16.mxu0 %v4091_v13  ;;  %2518 = vmatprep.subr.bf16.mxu1 %v4093_v17  ;;  %v295_v11 = vld [vmem:[%s6130_s1 + $0x828] sm:$0xff]  ;;  %v4149_v13 = vcombine.high %v283_v2, %v287_v4  ;;  %v4148_v17 = vcombine.low %v283_v2, %v287_v4 }
  0x64   :  { %v4157_v22 = vcombine.high %v291_v10, %v295_v11  ;;  %v4156_v27 = vcombine.low %v291_v10, %v295_v11 }
  0x66   :  { %2396 = vmatpush1.bf16.msra.mxu0 %v4090_v19  ;;  %2519 = vmatpush1.bf16.msra.mxu1 %v4092_v20  ;;  %v302_v19 = vld [vmem:[%s6130_s1 + $0x860] sm:$0xff]  ;;  %v299_v20 = vld [vmem:[%s6130_s1 + $0x848] sm:$0xff] }
  0x67   :  { %2397 = vmatprep.subr.bf16.mxu0 %v4099_v21  ;;  %2520 = vmatprep.subr.bf16.mxu1 %v4101_v26  ;;  %v303_v21 = vld [vmem:[%s6130_s1 + $0x868] sm:$0xff]  ;;  %v4154_v26 = vcombine.low %v290_v6, %v294_v9 }
  0x68   :  { %v4165_v31 = vcombine.high %v299_v20, %v303_v21 }
  0x6a   :  { %2398 = vmatpush1.bf16.msra.mxu0 %v4098_v28  ;;  %2521 = vmatpush1.bf16.msra.mxu1 %v4100_v29  ;;  %v4163_v28 = vcombine.high %v298_v16, %v302_v19  ;;  %v306_v29 = vld [vmem:[%s6130_s1 + $0x880] sm:$0xff] }
  0x6b   :  { %2399 = vmatprep.subr.bf16.mxu0 %v4107_v30  ;;  %2522 = vmatprep.subr.bf16.mxu1 %v4109_v34  ;;  %v310_v30 = vld [vmem:[%s6130_s1 + $0x8a0] sm:$0xff]  ;;  %v311_v34 = vld [vmem:[%s6130_s1 + $0x8a8] sm:$0xff] }
  0x6e   :  { %2400 = vmatpush1.bf16.msra.mxu0 %v4106_v36  ;;  %2523 = vmatpush1.bf16.msra.mxu1 %v4108_v37 }
  0x6f   :  { %2401 = vmatprep.subr.bf16.mxu0 %v4115_v38  ;;  %2524 = vmatprep.subr.bf16.mxu1 %v4117_v42 }
  0x72   :  { %2402 = vmatpush1.bf16.msra.mxu0 %v4114_v44  ;;  %2525 = vmatpush1.bf16.msra.mxu1 %v4116_v45 }
  0x73   :  { %2403 = vmatprep.subr.bf16.mxu0 %v4123_v46  ;;  %2526 = vmatprep.subr.bf16.mxu1 %v4125_v50 }
  0x76   :  { %2404 = vmatpush1.bf16.msra.mxu0 %v4122_v52  ;;  %2527 = vmatpush1.bf16.msra.mxu1 %v4124_v53 }
  0x77   :  { %2405 = vmatprep.subr.bf16.mxu0 %v4131_v54  ;;  %2528 = vmatprep.subr.bf16.mxu1 %v4133_v59 }
  0x7a   :  { %2406 = vmatpush1.bf16.msra.mxu0 %v4130_v61  ;;  %2529 = vmatpush1.bf16.msra.mxu1 %v4132_v62 }
  0x7b   :  { %2407 = vmatprep.subr.bf16.mxu0 %v4139_v63  ;;  %2530 = vmatprep.subr.bf16.mxu1 %v4141_v3 }
  0x7e   :  { %2408 = vmatpush1.bf16.msra.mxu0 %v4138_v5  ;;  %2531 = vmatpush1.bf16.msra.mxu1 %v4140_v7 }
  0x7f   :  { %2409 = vmatprep.subr.bf16.mxu0 %v4147_v8  ;;  %2532 = vmatprep.subr.bf16.mxu1 %v4149_v13 }
  0x82   :  { %2410 = vmatpush1.bf16.msra.mxu0 %v4146_v15  ;;  %2533 = vmatpush1.bf16.msra.mxu1 %v4148_v17 }
  0x83   :  { %2420 = vmatprep.subr.bf16.mxu0 %v4155_v18  ;;  %2543 = vmatprep.subr.bf16.mxu1 %v4157_v22 }
  0x85   :  { %2412 = vmatmul.mubr.bf16.vlgmr.msra.gmra.mrb[0].mxu0 %v5040_v25 }
  0x86   :  { %10 = vsyncpa [#allocation3], 0  ;;  %2421 = vmatpush1.bf16.msra.mxu0 %v4154_v26  ;;  %2535 = vmatmul.mubr.bf16.vlgmr.msra.gmra.mrb[0].mxu1 %v5040_v25  ;;  %v4162_v35 = vcombine.low %v298_v16, %v302_v19  ;;  %v4164_v36 = vcombine.low %v299_v20, %v303_v21  ;;  %v4171_v37 = vcombine.high %v306_v29, %v310_v30  ;;  %v314_v39 = vld [vmem:[%s6130_s1 + $0x8c0] sm:$0xff]  ;;  %v315_v41 = vld [vmem:[%s6130_s1 + $0x8c8] sm:$0xff]  ;;  %vm3882_vm0 = vcmask 261120  }
  0x87   :  { %2544 = vmatpush1.bf16.msra.mxu1 %v4156_v27  ;;  %2422 = vmatprep.subr.bf16.mxu0 %v4163_v28  ;;  %v4173_v38 = vcombine.high %v307_v32, %v311_v34  ;;  %v318_v40 = vld [vmem:[%s6130_s1 + $0x8e0] sm:$0xff]  ;;  %v319_v42 = vld [vmem:[%s6130_s1 + $0x8e8] sm:$0xff]  ;;  %v4170_v43 = vcombine.low %v306_v29, %v310_v30  ;;  %v4172_v44 = vcombine.low %v307_v32, %v311_v34 }
  0x88   :  { %2545 = vmatprep.subr.bf16.mxu1 %v4165_v31  ;;  %2452 = vmatprep.mubr.bf16.mxu0 %v5051_v33  ;;  %v4179_v45 = vcombine.high %v314_v39, %v318_v40  ;;  %v4181_v46 = vcombine.high %v315_v41, %v319_v42  ;;  %v322_v47 = vld [vmem:[%s6130_s1 + $0x900] sm:$0xff]  ;;  %v323_v49 = vld [vmem:[%s6130_s1 + $0x908] sm:$0xff]  ;;  %v4178_v51 = vcombine.low %v314_v39, %v318_v40 }
  0x89   :  { %2575 = vmatprep.mubr.bf16.mxu1 %v5051_v33  ;;  %v326_v48 = vld [vmem:[%s6130_s1 + $0x920] sm:$0xff]  ;;  %v327_v50 = vld [vmem:[%s6130_s1 + $0x928] sm:$0xff]  ;;  %v4180_v52 = vcombine.low %v315_v41, %v319_v42 }
  0x8a   :  { %2423 = vmatpush1.bf16.msra.mxu0 %v4162_v35  ;;  %v4187_v53 = vcombine.high %v322_v47, %v326_v48  ;;  %v4189_v54 = vcombine.high %v323_v49, %v327_v50  ;;  %v330_v55 = vld [vmem:[%s6130_s1 + $0x940] sm:$0xff]  ;;  %v331_v58 = vld [vmem:[%s6130_s1 + $0x948] sm:$0xff]  ;;  %v4186_v60 = vcombine.low %v322_v47, %v326_v48  ;;  %v4188_v61 = vcombine.low %v323_v49, %v327_v50 }
  0x8b   :  { %2546 = vmatpush1.bf16.msra.mxu1 %v4164_v36  ;;  %2424 = vmatprep.subr.bf16.mxu0 %v4171_v37  ;;  %v334_v56 = vld [vmem:[%s6130_s1 + $0x960] sm:$0xff]  ;;  %v335_v59 = vld [vmem:[%s6130_s1 + $0x968] sm:$0xff] }
  0x8c   :  { %2547 = vmatprep.subr.bf16.mxu1 %v4173_v38  ;;  %v4195_v62 = vcombine.high %v330_v55, %v334_v56  ;;  %v4197_v63 = vcombine.high %v331_v58, %v335_v59  ;;  %v338_v0 = vld [vmem:[%s6130_s1 + $0x980] sm:$0xff]  ;;  %v339_v2 = vld [vmem:[%s6130_s1 + $0x988] sm:$0xff]  ;;  %v4194_v4 = vcombine.low %v330_v55, %v334_v56  ;;  %v4196_v5 = vcombine.low %v331_v58, %v335_v59 }
  0x8d   :  { %v342_v1 = vld [vmem:[%s6130_s1 + $0x9a0] sm:$0xff]  ;;  %v343_v3 = vld [vmem:[%s6130_s1 + $0x9a8] sm:$0xff] }
  0x8e   :  { %2425 = vmatpush1.bf16.msra.mxu0 %v4170_v43  ;;  %v4203_v6 = vcombine.high %v338_v0, %v342_v1  ;;  %v4205_v7 = vcombine.high %v339_v2, %v343_v3  ;;  %v346_v8 = vld [vmem:[%s6130_s1 + $0x9c0] sm:$0xff]  ;;  %v347_v10 = vld [vmem:[%s6130_s1 + $0x9c8] sm:$0xff]  ;;  %v4202_v13 = vcombine.low %v338_v0, %v342_v1  ;;  %v4204_v14 = vcombine.low %v339_v2, %v343_v3 }
  0x8f   :  { %2548 = vmatpush1.bf16.msra.mxu1 %v4172_v44  ;;  %2426 = vmatprep.subr.bf16.mxu0 %v4179_v45  ;;  %v350_v9 = vld [vmem:[%s6130_s1 + $0x9e0] sm:$0xff]  ;;  %v351_v11 = vld [vmem:[%s6130_s1 + $0x9e8] sm:$0xff] }
  0x90   :  { %2549 = vmatprep.subr.bf16.mxu1 %v4181_v46  ;;  %v4211_v15 = vcombine.high %v346_v8, %v350_v9  ;;  %v4213_v16 = vcombine.high %v347_v10, %v351_v11  ;;  %v354_v17 = vld [vmem:[%s6130_s1 + $0xa00] sm:$0xff]  ;;  %v355_v19 = vld [vmem:[%s6130_s1 + $0xa08] sm:$0xff]  ;;  %v4210_v21 = vcombine.low %v346_v8, %v350_v9  ;;  %v4212_v22 = vcombine.low %v347_v10, %v351_v11 }
  0x91   :  { %v358_v18 = vld [vmem:[%s6130_s1 + $0xa20] sm:$0xff]  ;;  %v359_v20 = vld [vmem:[%s6130_s1 + $0xa28] sm:$0xff] }
  0x92   :  { %2427 = vmatpush1.bf16.msra.mxu0 %v4178_v51  ;;  %v4219_v24 = vcombine.high %v354_v17, %v358_v18  ;;  %v4221_v26 = vcombine.high %v355_v19, %v359_v20  ;;  %v362_v27 = vld [vmem:[%s6130_s1 + $0xa40] sm:$0xff]  ;;  %v363_v29 = vld [vmem:[%s6130_s1 + $0xa48] sm:$0xff]  ;;  %v4218_v31 = vcombine.low %v354_v17, %v358_v18  ;;  %v4220_v32 = vcombine.low %v355_v19, %v359_v20 }
  0x93   :  { %2550 = vmatpush1.bf16.msra.mxu1 %v4180_v52  ;;  %2428 = vmatprep.subr.bf16.mxu0 %v4187_v53  ;;  %v366_v28 = vld [vmem:[%s6130_s1 + $0xa60] sm:$0xff]  ;;  %v367_v30 = vld [vmem:[%s6130_s1 + $0xa68] sm:$0xff] }
  0x94   :  { %2551 = vmatprep.subr.bf16.mxu1 %v4189_v54  ;;  %v4227_v34 = vcombine.high %v362_v27, %v366_v28  ;;  %v4229_v35 = vcombine.high %v363_v29, %v367_v30  ;;  %v370_v36 = vld [vmem:[%s6130_s1 + $0xa80] sm:$0xff]  ;;  %v371_v38 = vld [vmem:[%s6130_s1 + $0xa88] sm:$0xff]  ;;  %v4226_v40 = vcombine.low %v362_v27, %v366_v28  ;;  %v4228_v41 = vcombine.low %v363_v29, %v367_v30  ;;  %v41_v27 = vld [vmem:[%s6130_s1 + $0x38] sm:$0xff] }
  0x95   :  { %v374_v37 = vld [vmem:[%s6130_s1 + $0xaa0] sm:$0xff]  ;;  %v375_v39 = vld [vmem:[%s6130_s1 + $0xaa8] sm:$0xff] }
  0x96   :  { %2429 = vmatpush1.bf16.msra.mxu0 %v4186_v60  ;;  %v4235_v42 = vcombine.high %v370_v36, %v374_v37  ;;  %v4237_v43 = vcombine.high %v371_v38, %v375_v39  ;;  %v378_v44 = vld [vmem:[%s6130_s1 + $0xac0] sm:$0xff]  ;;  %v379_v46 = vld [vmem:[%s6130_s1 + $0xac8] sm:$0xff]  ;;  %v4234_v48 = vcombine.low %v370_v36, %v374_v37  ;;  %v4236_v49 = vcombine.low %v371_v38, %v375_v39  ;;  %v45_v37 = vld [vmem:[%s6130_s1 + $0x58] sm:$0xff] }
  0x97   :  { %2552 = vmatpush1.bf16.msra.mxu1 %v4188_v61  ;;  %2430 = vmatprep.subr.bf16.mxu0 %v4195_v62  ;;  %v382_v45 = vld [vmem:[%s6130_s1 + $0xae0] sm:$0xff]  ;;  %v383_v47 = vld [vmem:[%s6130_s1 + $0xae8] sm:$0xff]  ;;  %v49_v38 = vld [vmem:[%s6130_s1 + $0x78] sm:$0xff] }
  0x98   :  { %2553 = vmatprep.subr.bf16.mxu1 %v4197_v63  ;;  %v4243_v50 = vcombine.high %v378_v44, %v382_v45  ;;  %v4245_v51 = vcombine.high %v379_v46, %v383_v47  ;;  %v386_v52 = vld [vmem:[%s6130_s1 + $0xb00] sm:$0xff]  ;;  %v387_v54 = vld [vmem:[%s6130_s1 + $0xb08] sm:$0xff]  ;;  %v4242_v56 = vcombine.low %v378_v44, %v382_v45  ;;  %v4244_v58 = vcombine.low %v379_v46, %v383_v47  ;;  %v56_v44 = vld [vmem:[%s6130_s1 + $0xb0] sm:$0xff] }
  0x99   :  { %v390_v53 = vld [vmem:[%s6130_s1 + $0xb20] sm:$0xff]  ;;  %v391_v55 = vld [vmem:[%s6130_s1 + $0xb28] sm:$0xff]  ;;  %v53_v45 = vld [vmem:[%s6130_s1 + $0x98] sm:$0xff] }
  0x9a   :  { %2431 = vmatpush1.bf16.msra.mxu0 %v4194_v4  ;;  %v4251_v59 = vcombine.high %v386_v52, %v390_v53  ;;  %v4253_v60 = vcombine.high %v387_v54, %v391_v55  ;;  %v394_v61 = vld [vmem:[%s6130_s1 + $0xb40] sm:$0xff]  ;;  %v395_v63 = vld [vmem:[%s6130_s1 + $0xb48] sm:$0xff]  ;;  %v4250_v1 = vcombine.low %v386_v52, %v390_v53  ;;  %v4252_v2 = vcombine.low %v387_v54, %v391_v55  ;;  %v57_v46 = vld [vmem:[%s6130_s1 + $0xb8] sm:$0xff] }
  0x9b   :  { %2554 = vmatpush1.bf16.msra.mxu1 %v4196_v5  ;;  %2432 = vmatprep.subr.bf16.mxu0 %v4203_v6  ;;  %v398_v62 = vld [vmem:[%s6130_s1 + $0xb60] sm:$0xff]  ;;  %v399_v0 = vld [vmem:[%s6130_s1 + $0xb68] sm:$0xff]  ;;  %v64_v52 = vld [vmem:[%s6130_s1 + $0xf0] sm:$0xff] }
  0x9c   :  { %2555 = vmatprep.subr.bf16.mxu1 %v4205_v7  ;;  %v4259_v3 = vcombine.high %v394_v61, %v398_v62  ;;  %v4261_v4 = vcombine.high %v395_v63, %v399_v0  ;;  %v402_v5 = vld [vmem:[%s6130_s1 + $0xb80] sm:$0xff]  ;;  %v403_v7 = vld [vmem:[%s6130_s1 + $0xb88] sm:$0xff]  ;;  %v4258_v9 = vcombine.low %v394_v61, %v398_v62  ;;  %v4260_v10 = vcombine.low %v395_v63, %v399_v0  ;;  %v61_v53 = vld [vmem:[%s6130_s1 + $0xd8] sm:$0xff] }
  0x9d   :  { %v406_v6 = vld [vmem:[%s6130_s1 + $0xba0] sm:$0xff]  ;;  %v407_v8 = vld [vmem:[%s6130_s1 + $0xba8] sm:$0xff]  ;;  %v65_v54 = vld [vmem:[%s6130_s1 + $0xf8] sm:$0xff] }
  0x9e   :  { %2433 = vmatpush1.bf16.msra.mxu0 %v4202_v13  ;;  %v4267_v11 = vcombine.high %v402_v5, %v406_v6  ;;  %v4269_v13 = vcombine.high %v403_v7, %v407_v8  ;;  %v415_v17 = vld [vmem:[%s6130_s1 + $0xbe8] sm:$0xff]  ;;  %v4266_v18 = vcombine.low %v402_v5, %v406_v6  ;;  %v4268_v19 = vcombine.low %v403_v7, %v407_v8  ;;  %v26_v29 = vld [vmem:[%s6129_s0 + $0x20] sm:$0xff]  ;;  %v72_v61 = vld [vmem:[%s6130_s1 + $0x130] sm:$0xff] }
  0x9f   :  { %2556 = vmatpush1.bf16.msra.mxu1 %v4204_v14  ;;  %2434 = vmatprep.subr.bf16.mxu0 %v4211_v15  ;;  %v410_v14 = vld [vmem:[%s6130_s1 + $0xbc0] sm:$0xff]  ;;  %v5237_v36 = vpack.c.bf16 %v26_v29, %v26_v29  ;;  %v73_v62 = vld [vmem:[%s6130_s1 + $0x138] sm:$0xff]  ;;  %v3928_v0 = vcombine.low %v61_v53, %v65_v54 }
  0xa0   :  { %2557 = vmatprep.subr.bf16.mxu1 %v4213_v16  ;;  %v414_v15 = vld [vmem:[%s6130_s1 + $0xbe0] sm:$0xff]  ;;  %v411_v16 = vld [vmem:[%s6130_s1 + $0xbc8] sm:$0xff]  ;;  %v77_v5 = vld [vmem:[%s6130_s1 + $0x158] sm:$0xff] }
  0xa1   :  { %v4275_v20 = vcombine.high %v410_v14, %v414_v15  ;;  %v4274_v28 = vcombine.low %v410_v14, %v414_v15  ;;  %v4276_v30 = vcombine.low %v411_v16, %v415_v17  ;;  %v81_v6 = vld [vmem:[%s6130_s1 + $0x178] sm:$0xff] }
  0xa2   :  { %2435 = vmatpush1.bf16.msra.mxu0 %v4210_v21  ;;  %v4277_v21 = vcombine.high %v411_v16, %v415_v17  ;;  %v85_v14 = vld [vmem:[%s6130_s1 + $0x198] sm:$0xff]  ;;  %v3944_v17 = vcombine.low %v77_v5, %v81_v6 }
  0xa3   :  { %2558 = vmatpush1.bf16.msra.mxu1 %v4212_v22  ;;  %2436 = vmatprep.subr.bf16.mxu0 %v4219_v24  ;;  %v36_v22 = vld [vmem:[%s6130_s1 + $0x10] sm:$0xff]  ;;  %v89_v15 = vld [vmem:[%s6130_s1 + $0x1b8] sm:$0xff] }
  0xa4   :  { %2559 = vmatprep.subr.bf16.mxu1 %v4221_v26  ;;  %v40_v24 = vld [vmem:[%s6130_s1 + $0x30] sm:$0xff]  ;;  %v37_v26 = vld [vmem:[%s6130_s1 + $0x18] sm:$0xff] }
  0xa5   :  { %v3902_v39 = vcombine.low %v36_v22, %v40_v24 }
  0xa6   :  { %2437 = vmatpush1.bf16.msra.mxu0 %v4218_v31  ;;  %v3903_v31 = vcombine.high %v36_v22, %v40_v24  ;;  %v93_v22 = vld [vmem:[%s6130_s1 + $0x1d8] sm:$0xff] }
  0xa7   :  { %2560 = vmatpush1.bf16.msra.mxu1 %v4220_v32  ;;  %2438 = vmatprep.subr.bf16.mxu0 %v4227_v34  ;;  %v3905_v32 = vcombine.high %v37_v26, %v41_v27  ;;  %v44_v34 = vld [vmem:[%s6130_s1 + $0x50] sm:$0xff]  ;;  %v97_v24 = vld [vmem:[%s6130_s1 + $0x1f8] sm:$0xff] }
  0xa8   :  { %2561 = vmatprep.subr.bf16.mxu1 %v4229_v35  ;;  %v48_v35 = vld [vmem:[%s6130_s1 + $0x70] sm:$0xff]  ;;  %v3961_v29 = vcombine.high %v93_v22, %v97_v24 }
  0xa9   :  { %v3910_v47 = vcombine.low %v44_v34, %v48_v35 }
  0xaa   :  { %2439 = vmatpush1.bf16.msra.mxu0 %v4226_v40  ;;  %v3904_v40 = vcombine.low %v37_v26, %v41_v27  ;;  %v3952_v27 = vcombine.low %v85_v14, %v89_v15 }
  0xab   :  { %2562 = vmatpush1.bf16.msra.mxu1 %v4228_v41  ;;  %2440 = vmatprep.subr.bf16.mxu0 %v4235_v42  ;;  %v3911_v41 = vcombine.high %v44_v34, %v48_v35  ;;  %v3913_v42 = vcombine.high %v45_v37, %v49_v38  ;;  %v105_v34 = vld [vmem:[%s6130_s1 + $0x238] sm:$0xff] }
  0xac   :  { %2563 = vmatprep.subr.bf16.mxu1 %v4237_v43  ;;  %v52_v43 = vld [vmem:[%s6130_s1 + $0x90] sm:$0xff] }
  0xad   :  { %v3918_v55 = vcombine.low %v52_v43, %v56_v44 }
  0xae   :  { %2441 = vmatpush1.bf16.msra.mxu0 %v4234_v48  ;;  %v3912_v48 = vcombine.low %v45_v37, %v49_v38  ;;  %v3960_v37 = vcombine.low %v93_v22, %v97_v24 }
  0xaf   :  { %2564 = vmatpush1.bf16.msra.mxu1 %v4236_v49  ;;  %2442 = vmatprep.subr.bf16.mxu0 %v4243_v50  ;;  %v3919_v49 = vcombine.high %v52_v43, %v56_v44  ;;  %v3921_v50 = vcombine.high %v53_v45, %v57_v46  ;;  %v113_v43 = vld [vmem:[%s6130_s1 + $0x278] sm:$0xff] }
  0xb0   :  { %2565 = vmatprep.subr.bf16.mxu1 %v4245_v51  ;;  %v60_v51 = vld [vmem:[%s6130_s1 + $0xd0] sm:$0xff] }
  0xb1   :  { %v3926_v63 = vcombine.low %v60_v51, %v64_v52 }
  0xb2   :  { %2443 = vmatpush1.bf16.msra.mxu0 %v4242_v56  ;;  %v3920_v56 = vcombine.low %v53_v45, %v57_v46 }
  0xb3   :  { %2566 = vmatpush1.bf16.msra.mxu1 %v4244_v58  ;;  %2444 = vmatprep.subr.bf16.mxu0 %v4251_v59  ;;  %v3927_v58 = vcombine.high %v60_v51, %v64_v52  ;;  %v3929_v59 = vcombine.high %v61_v53, %v65_v54  ;;  %v121_v51 = vld [vmem:[%s6130_s1 + $0x2b8] sm:$0xff] }
  0xb4   :  { %2567 = vmatprep.subr.bf16.mxu1 %v4253_v60  ;;  %v68_v60 = vld [vmem:[%s6130_s1 + $0x110] sm:$0xff] }
  0xb5   :  { %v3934_v7 = vcombine.low %v68_v60, %v72_v61 }
  0xb6   :  { %2445 = vmatpush1.bf16.msra.mxu0 %v4250_v1  ;;  %v3935_v1 = vcombine.high %v68_v60, %v72_v61  ;;  %v129_v60 = vld [vmem:[%s6130_s1 + $0x2f8] sm:$0xff] }
  0xb7   :  { %2568 = vmatpush1.bf16.msra.mxu1 %v4252_v2  ;;  %2446 = vmatprep.subr.bf16.mxu0 %v4259_v3  ;;  %v76_v3 = vld [vmem:[%s6130_s1 + $0x150] sm:$0xff] }
  0xb8   :  { %2569 = vmatprep.subr.bf16.mxu1 %v4261_v4  ;;  %v80_v4 = vld [vmem:[%s6130_s1 + $0x170] sm:$0xff] }
  0xb9   :  { %v3942_v16 = vcombine.low %v76_v3, %v80_v4 }
  0xba   :  { %2447 = vmatpush1.bf16.msra.mxu0 %v4258_v9  ;;  %v3943_v9 = vcombine.high %v76_v3, %v80_v4  ;;  %v137_v3 = vld [vmem:[%s6130_s1 + $0x338] sm:$0xff] }
  0xbb   :  { %2570 = vmatpush1.bf16.msra.mxu1 %v4260_v10  ;;  %2448 = vmatprep.subr.bf16.mxu0 %v4267_v11  ;;  %v3945_v10 = vcombine.high %v77_v5, %v81_v6  ;;  %v84_v11 = vld [vmem:[%s6130_s1 + $0x190] sm:$0xff] }
  0xbc   :  { %2571 = vmatprep.subr.bf16.mxu1 %v4269_v13  ;;  %v88_v13 = vld [vmem:[%s6130_s1 + $0x1b0] sm:$0xff] }
  0xbd   :  { %v3950_v26 = vcombine.low %v84_v11, %v88_v13 }
  0xbe   :  { %2449 = vmatpush1.bf16.msra.mxu0 %v4266_v18  ;;  %v3951_v18 = vcombine.high %v84_v11, %v88_v13  ;;  %v145_v11 = vld [vmem:[%s6130_s1 + $0x378] sm:$0xff] }
  0xbf   :  { %2572 = vmatpush1.bf16.msra.mxu1 %v4268_v19  ;;  %2450 = vmatprep.subr.bf16.mxu0 %v4275_v20  ;;  %v3953_v19 = vcombine.high %v85_v14, %v89_v15  ;;  %v92_v20 = vld [vmem:[%s6130_s1 + $0x1d0] sm:$0xff] }
  0xc0   :  { %2573 = vmatprep.subr.bf16.mxu1 %v4277_v21  ;;  %v96_v21 = vld [vmem:[%s6130_s1 + $0x1f0] sm:$0xff] }
  0xc1   :  { %v3958_v35 = vcombine.low %v92_v20, %v96_v21 }
  0xc2   :  { %2451 = vmatpush1.bf16.msra.mxu0 %v4274_v28  ;;  %v3959_v28 = vcombine.high %v92_v20, %v96_v21  ;;  %v153_v20 = vld [vmem:[%s6130_s1 + $0x3b8] sm:$0xff] }
  0xc3   :  { %2574 = vmatpush1.bf16.msra.mxu1 %v4276_v30  ;;  %2584 = vmatprep.subr.bf16.mxu0 %v3903_v31  ;;  %v100_v30 = vld [vmem:[%s6130_s1 + $0x210] sm:$0xff] }
  0xc4   :  { %2707 = vmatprep.subr.bf16.mxu1 %v3905_v32  ;;  %v104_v31 = vld [vmem:[%s6130_s1 + $0x230] sm:$0xff]  ;;  %v101_v32 = vld [vmem:[%s6130_s1 + $0x218] sm:$0xff] }
  0xc5   :  { %2453 = vmatmul.mubr.bf16.vlgmr.msra.gmra.mrb[0].mxu0 %v5237_v36  ;;  %v3967_v38 = vcombine.high %v100_v30, %v104_v31  ;;  %v3966_v44 = vcombine.low %v100_v30, %v104_v31  ;;  %v3968_v45 = vcombine.low %v101_v32, %v105_v34  ;;  %v161_v30 = vld [vmem:[%s6130_s1 + $0x3f8] sm:$0xff] }
  0xc6   :  { %2576 = vmatmul.mubr.bf16.vlgmr.msra.gmra.mrb[0].mxu1 %v5237_v36  ;;  %2585 = vmatpush1.bf16.msra.mxu0 %v3902_v39  ;;  %v3969_v39 = vcombine.high %v101_v32, %v105_v34 }
  0xc7   :  { %2708 = vmatpush1.bf16.msra.mxu1 %v3904_v40  ;;  %2586 = vmatprep.subr.bf16.mxu0 %v3911_v41  ;;  %v108_v40 = vld [vmem:[%s6130_s1 + $0x250] sm:$0xff] }
  0xc8   :  { %2709 = vmatprep.subr.bf16.mxu1 %v3913_v42  ;;  %2616 = vmatprep.mubr.bf16.mxu0 %v4698_v57  ;;  %v112_v41 = vld [vmem:[%s6130_s1 + $0x270] sm:$0xff]  ;;  %v109_v42 = vld [vmem:[%s6130_s1 + $0x258] sm:$0xff] }
  0xc9   :  { %2739 = vmatprep.mubr.bf16.mxu1 %v4698_v57  ;;  %v69_v57 = vld [vmem:[%s6130_s1 + $0x118] sm:$0xff]  ;;  %v3975_v46 = vcombine.high %v108_v40, %v112_v41  ;;  %v3974_v52 = vcombine.low %v108_v40, %v112_v41  ;;  %v3976_v53 = vcombine.low %v109_v42, %v113_v43 }
  0xca   :  { %2587 = vmatpush1.bf16.msra.mxu0 %v3910_v47  ;;  %v3937_v2 = vcombine.high %v69_v57, %v73_v62  ;;  %v3936_v8 = vcombine.low %v69_v57, %v73_v62  ;;  %v3977_v47 = vcombine.high %v109_v42, %v113_v43  ;;  %v169_v40 = vld [vmem:[%s6130_s1 + $0x438] sm:$0xff] }
  0xcb   :  { %2710 = vmatpush1.bf16.msra.mxu1 %v3912_v48  ;;  %2588 = vmatprep.subr.bf16.mxu0 %v3919_v49  ;;  %v116_v48 = vld [vmem:[%s6130_s1 + $0x290] sm:$0xff] }
  0xcc   :  { %2711 = vmatprep.subr.bf16.mxu1 %v3921_v50  ;;  %v120_v49 = vld [vmem:[%s6130_s1 + $0x2b0] sm:$0xff]  ;;  %v117_v50 = vld [vmem:[%s6130_s1 + $0x298] sm:$0xff] }
  0xcd   :  { %v3983_v54 = vcombine.high %v116_v48, %v120_v49  ;;  %v3982_v61 = vcombine.low %v116_v48, %v120_v49  ;;  %v3984_v57 = vcombine.low %v117_v50, %v121_v51  ;;  %v177_v48 = vld [vmem:[%s6130_s1 + $0x478] sm:$0xff] }
  0xce   :  { %2589 = vmatpush1.bf16.msra.mxu0 %v3918_v55  ;;  %v3985_v55 = vcombine.high %v117_v50, %v121_v51 }
  0xcf   :  { %2712 = vmatpush1.bf16.msra.mxu1 %v3920_v56  ;;  %2590 = vmatprep.subr.bf16.mxu0 %v3927_v58  ;;  %v124_v56 = vld [vmem:[%s6130_s1 + $0x2d0] sm:$0xff] }
  0xd0   :  { %2713 = vmatprep.subr.bf16.mxu1 %v3929_v59  ;;  %v128_v58 = vld [vmem:[%s6130_s1 + $0x2f0] sm:$0xff]  ;;  %v125_v59 = vld [vmem:[%s6130_s1 + $0x2d8] sm:$0xff] }
  0xd1   :  { %v3991_v62 = vcombine.high %v124_v56, %v128_v58  ;;  %v3990_v4 = vcombine.low %v124_v56, %v128_v58  ;;  %v3992_v5 = vcombine.low %v125_v59, %v129_v60  ;;  %v185_v56 = vld [vmem:[%s6130_s1 + $0x4b8] sm:$0xff] }
  0xd2   :  { %2591 = vmatpush1.bf16.msra.mxu0 %v3926_v63  ;;  %v3993_v63 = vcombine.high %v125_v59, %v129_v60 }
  0xd3   :  { %2714 = vmatpush1.bf16.msra.mxu1 %v3928_v0  ;;  %2592 = vmatprep.subr.bf16.mxu0 %v3935_v1  ;;  %v132_v0 = vld [vmem:[%s6130_s1 + $0x310] sm:$0xff] }
  0xd4   :  { %2715 = vmatprep.subr.bf16.mxu1 %v3937_v2  ;;  %v136_v1 = vld [vmem:[%s6130_s1 + $0x330] sm:$0xff]  ;;  %v133_v2 = vld [vmem:[%s6130_s1 + $0x318] sm:$0xff] }
  0xd5   :  { %v3999_v6 = vcombine.high %v132_v0, %v136_v1  ;;  %v3998_v13 = vcombine.low %v132_v0, %v136_v1  ;;  %v4000_v14 = vcombine.low %v133_v2, %v137_v3 }
  0xd6   :  { %2593 = vmatpush1.bf16.msra.mxu0 %v3934_v7  ;;  %v4001_v7 = vcombine.high %v133_v2, %v137_v3 }
  0xd7   :  { %2716 = vmatpush1.bf16.msra.mxu1 %v3936_v8  ;;  %2594 = vmatprep.subr.bf16.mxu0 %v3943_v9  ;;  %v140_v8 = vld [vmem:[%s6130_s1 + $0x350] sm:$0xff] }
  0xd8   :  { %2717 = vmatprep.subr.bf16.mxu1 %v3945_v10  ;;  %v144_v9 = vld [vmem:[%s6130_s1 + $0x370] sm:$0xff]  ;;  %v141_v10 = vld [vmem:[%s6130_s1 + $0x358] sm:$0xff] }
  0xd9   :  { %v4007_v15 = vcombine.high %v140_v8, %v144_v9  ;;  %v4006_v21 = vcombine.low %v140_v8, %v144_v9  ;;  %v4008_v22 = vcombine.low %v141_v10, %v145_v11 }
  0xda   :  { %2595 = vmatpush1.bf16.msra.mxu0 %v3942_v16  ;;  %v4009_v16 = vcombine.high %v141_v10, %v145_v11  ;;  %v204_v11 = vld [vmem:[%s6130_s1 + $0x550] sm:$0xff] }
  0xdb   :  { %2718 = vmatpush1.bf16.msra.mxu1 %v3944_v17  ;;  %2596 = vmatprep.subr.bf16.mxu0 %v3951_v18  ;;  %v148_v17 = vld [vmem:[%s6130_s1 + $0x390] sm:$0xff] }
  0xdc   :  { %2719 = vmatprep.subr.bf16.mxu1 %v3953_v19  ;;  %v152_v18 = vld [vmem:[%s6130_s1 + $0x3b0] sm:$0xff]  ;;  %v149_v19 = vld [vmem:[%s6130_s1 + $0x398] sm:$0xff] }
  0xdd   :  { %v4015_v24 = vcombine.high %v148_v17, %v152_v18  ;;  %v4014_v31 = vcombine.low %v148_v17, %v152_v18  ;;  %v4016_v32 = vcombine.low %v149_v19, %v153_v20 }
  0xde   :  { %2597 = vmatpush1.bf16.msra.mxu0 %v3950_v26  ;;  %v4017_v26 = vcombine.high %v149_v19, %v153_v20  ;;  %v212_v20 = vld [vmem:[%s6130_s1 + $0x590] sm:$0xff] }
  0xdf   :  { %2720 = vmatpush1.bf16.msra.mxu1 %v3952_v27  ;;  %2598 = vmatprep.subr.bf16.mxu0 %v3959_v28  ;;  %v156_v27 = vld [vmem:[%s6130_s1 + $0x3d0] sm:$0xff] }
  0xe0   :  { %2721 = vmatprep.subr.bf16.mxu1 %v3961_v29  ;;  %v160_v28 = vld [vmem:[%s6130_s1 + $0x3f0] sm:$0xff]  ;;  %v157_v29 = vld [vmem:[%s6130_s1 + $0x3d8] sm:$0xff] }
  0xe1   :  { %v4023_v34 = vcombine.high %v156_v27, %v160_v28  ;;  %v4022_v41 = vcombine.low %v156_v27, %v160_v28  ;;  %v4024_v42 = vcombine.low %v157_v29, %v161_v30 }
  0xe2   :  { %2599 = vmatpush1.bf16.msra.mxu0 %v3958_v35  ;;  %v4025_v35 = vcombine.high %v157_v29, %v161_v30  ;;  %v220_v30 = vld [vmem:[%s6130_s1 + $0x5d0] sm:$0xff] }
  0xe3   :  { %2722 = vmatpush1.bf16.msra.mxu1 %v3960_v37  ;;  %2600 = vmatprep.subr.bf16.mxu0 %v3967_v38  ;;  %v164_v37 = vld [vmem:[%s6130_s1 + $0x410] sm:$0xff] }
  0xe4   :  { %2723 = vmatprep.subr.bf16.mxu1 %v3969_v39  ;;  %v168_v38 = vld [vmem:[%s6130_s1 + $0x430] sm:$0xff]  ;;  %v165_v39 = vld [vmem:[%s6130_s1 + $0x418] sm:$0xff] }
  0xe5   :  { %v4031_v43 = vcombine.high %v164_v37, %v168_v38  ;;  %v4030_v49 = vcombine.low %v164_v37, %v168_v38  ;;  %v4032_v50 = vcombine.low %v165_v39, %v169_v40 }
  0xe6   :  { %2601 = vmatpush1.bf16.msra.mxu0 %v3966_v44  ;;  %v4033_v44 = vcombine.high %v165_v39, %v169_v40  ;;  %v228_v40 = vld [vmem:[%s6130_s1 + $0x610] sm:$0xff] }
  0xe7   :  { %2724 = vmatpush1.bf16.msra.mxu1 %v3968_v45  ;;  %2602 = vmatprep.subr.bf16.mxu0 %v3975_v46  ;;  %v172_v45 = vld [vmem:[%s6130_s1 + $0x450] sm:$0xff] }
  0xe8   :  { %2725 = vmatprep.subr.bf16.mxu1 %v3977_v47  ;;  %v176_v46 = vld [vmem:[%s6130_s1 + $0x470] sm:$0xff]  ;;  %v173_v47 = vld [vmem:[%s6130_s1 + $0x458] sm:$0xff] }
  0xe9   :  { %v4039_v51 = vcombine.high %v172_v45, %v176_v46  ;;  %v4038_v58 = vcombine.low %v172_v45, %v176_v46  ;;  %v4040_v59 = vcombine.low %v173_v47, %v177_v48 }
  0xea   :  { %2603 = vmatpush1.bf16.msra.mxu0 %v3974_v52  ;;  %v4041_v52 = vcombine.high %v173_v47, %v177_v48  ;;  %v236_v48 = vld [vmem:[%s6130_s1 + $0x650] sm:$0xff] }
  0xeb   :  { %2726 = vmatpush1.bf16.msra.mxu1 %v3976_v53  ;;  %2604 = vmatprep.subr.bf16.mxu0 %v3983_v54  ;;  %v180_v53 = vld [vmem:[%s6130_s1 + $0x490] sm:$0xff] }
  0xec   :  { %2727 = vmatprep.subr.bf16.mxu1 %v3985_v55  ;;  %v184_v54 = vld [vmem:[%s6130_s1 + $0x4b0] sm:$0xff]  ;;  %v181_v55 = vld [vmem:[%s6130_s1 + $0x498] sm:$0xff] }
  0xed   :  { %v4047_v60 = vcombine.high %v180_v53, %v184_v54  ;;  %v4046_v0 = vcombine.low %v180_v53, %v184_v54  ;;  %v4048_v1 = vcombine.low %v181_v55, %v185_v56 }
  0xee   :  { %2605 = vmatpush1.bf16.msra.mxu0 %v3982_v61  ;;  %v4049_v61 = vcombine.high %v181_v55, %v185_v56  ;;  %v244_v56 = vld [vmem:[%s6130_s1 + $0x690] sm:$0xff] }
  0xef   :  { %2728 = vmatpush1.bf16.msra.mxu1 %v3984_v57  ;;  %2606 = vmatprep.subr.bf16.mxu0 %v3991_v62  ;;  %v188_v57 = vld [vmem:[%s6130_s1 + $0x4d0] sm:$0xff] }
  0xf0   :  { %2729 = vmatprep.subr.bf16.mxu1 %v3993_v63  ;;  %v192_v62 = vld [vmem:[%s6130_s1 + $0x4f0] sm:$0xff]  ;;  %v193_v63 = vld [vmem:[%s6130_s1 + $0x4f8] sm:$0xff] }
  0xf1   :  { %v4055_v2 = vcombine.high %v188_v57, %v192_v62 }
  0xf2   :  { %2607 = vmatpush1.bf16.msra.mxu0 %v3990_v4  ;;  %v196_v4 = vld [vmem:[%s6130_s1 + $0x510] sm:$0xff] }
  0xf3   :  { %2730 = vmatpush1.bf16.msra.mxu1 %v3992_v5  ;;  %2608 = vmatprep.subr.bf16.mxu0 %v3999_v6  ;;  %v200_v5 = vld [vmem:[%s6130_s1 + $0x530] sm:$0xff]  ;;  %v201_v6 = vld [vmem:[%s6130_s1 + $0x538] sm:$0xff] }
  0xf4   :  { %2731 = vmatprep.subr.bf16.mxu1 %v4001_v7  ;;  %v4054_v7 = vcombine.low %v188_v57, %v192_v62  ;;  %v4063_v9 = vcombine.high %v196_v4, %v200_v5 }
  0xf6   :  { %2609 = vmatpush1.bf16.msra.mxu0 %v3998_v13  ;;  %v208_v13 = vld [vmem:[%s6130_s1 + $0x570] sm:$0xff] }
  0xf7   :  { %2732 = vmatpush1.bf16.msra.mxu1 %v4000_v14  ;;  %2610 = vmatprep.subr.bf16.mxu0 %v4007_v15  ;;  %v205_v14 = vld [vmem:[%s6130_s1 + $0x558] sm:$0xff]  ;;  %v4071_v18 = vcombine.high %v204_v11, %v208_v13 }
  0xf8   :  { %2733 = vmatprep.subr.bf16.mxu1 %v4009_v16  ;;  %v209_v15 = vld [vmem:[%s6130_s1 + $0x578] sm:$0xff]  ;;  %v4062_v16 = vcombine.low %v196_v4, %v200_v5 }
  0xf9   :  { %v4073_v19 = vcombine.high %v205_v14, %v209_v15  ;;  %v4072_v27 = vcombine.low %v205_v14, %v209_v15  ;;  %v268_v15 = vld [vmem:[%s6130_s1 + $0x750] sm:$0xff] }
  0xfa   :  { %2611 = vmatpush1.bf16.msra.mxu0 %v4006_v21  ;;  %v216_v21 = vld [vmem:[%s6130_s1 + $0x5b0] sm:$0xff] }
  0xfb   :  { %2734 = vmatpush1.bf16.msra.mxu1 %v4008_v22  ;;  %2612 = vmatprep.subr.bf16.mxu0 %v4015_v24  ;;  %v213_v22 = vld [vmem:[%s6130_s1 + $0x598] sm:$0xff]  ;;  %v4079_v28 = vcombine.high %v212_v20, %v216_v21 }
  0xfc   :  { %2735 = vmatprep.subr.bf16.mxu1 %v4017_v26  ;;  %v217_v24 = vld [vmem:[%s6130_s1 + $0x5b8] sm:$0xff]  ;;  %v4070_v26 = vcombine.low %v204_v11, %v208_v13 }
  0xfd   :  { %v4081_v29 = vcombine.high %v213_v22, %v217_v24  ;;  %v4080_v37 = vcombine.low %v213_v22, %v217_v24  ;;  %v276_v24 = vld [vmem:[%s6130_s1 + $0x790] sm:$0xff] }
  0xfe   :  { %2613 = vmatpush1.bf16.msra.mxu0 %v4014_v31  ;;  %v224_v31 = vld [vmem:[%s6130_s1 + $0x5f0] sm:$0xff] }
  0xff   :  { %2736 = vmatpush1.bf16.msra.mxu1 %v4016_v32  ;;  %2614 = vmatprep.subr.bf16.mxu0 %v4023_v34  ;;  %v221_v32 = vld [vmem:[%s6130_s1 + $0x5d8] sm:$0xff]  ;;  %v4087_v38 = vcombine.high %v220_v30, %v224_v31 }
 0x100   :  { %2737 = vmatprep.subr.bf16.mxu1 %v4025_v35  ;;  %v225_v34 = vld [vmem:[%s6130_s1 + $0x5f8] sm:$0xff]  ;;  %v4078_v35 = vcombine.low %v212_v20, %v216_v21 }
 0x101   :  { %v4089_v39 = vcombine.high %v221_v32, %v225_v34  ;;  %v4088_v45 = vcombine.low %v221_v32, %v225_v34  ;;  %v284_v34 = vld [vmem:[%s6130_s1 + $0x7d0] sm:$0xff] }
 0x102   :  { %2615 = vmatpush1.bf16.msra.mxu0 %v4022_v41  ;;  %v232_v41 = vld [vmem:[%s6130_s1 + $0x630] sm:$0xff] }
 0x103   :  { %2738 = vmatpush1.bf16.msra.mxu1 %v4024_v42  ;;  %2625 = vmatprep.subr.bf16.mxu0 %v4031_v43  ;;  %v229_v42 = vld [vmem:[%s6130_s1 + $0x618] sm:$0xff]  ;;  %v4095_v46 = vcombine.high %v228_v40, %v232_v41 }
 0x104   :  { %2748 = vmatprep.subr.bf16.mxu1 %v4033_v44  ;;  %v233_v43 = vld [vmem:[%s6130_s1 + $0x638] sm:$0xff]  ;;  %v4086_v44 = vcombine.low %v220_v30, %v224_v31 }
 0x105   :  { %2617 = vmatmul.mubr.bf16.vlgmr.msra.gmra.mrb[4].mxu0 %v4825_v12  ;;  %v4097_v47 = vcombine.high %v229_v42, %v233_v43  ;;  %v4096_v53 = vcombine.low %v229_v42, %v233_v43  ;;  %v292_v43 = vld [vmem:[%s6130_s1 + $0x810] sm:$0xff] }
 0x106   :  { %2626 = vmatpush1.bf16.msra.mxu0 %v4030_v49  ;;  %2740 = vmatmul.mubr.bf16.vlgmr.msra.gmra.mrb[4].mxu1 %v4825_v12  ;;  %v189_v12 = vld [vmem:[%s6130_s1 + $0x4d8] sm:$0xff]  ;;  %v240_v49 = vld [vmem:[%s6130_s1 + $0x670] sm:$0xff] }
 0x107   :  { %2749 = vmatpush1.bf16.msra.mxu1 %v4032_v50  ;;  %2627 = vmatprep.subr.bf16.mxu0 %v4039_v51  ;;  %v4057_v3 = vcombine.high %v189_v12, %v193_v63  ;;  %v4056_v8 = vcombine.low %v189_v12, %v193_v63  ;;  %v237_v50 = vld [vmem:[%s6130_s1 + $0x658] sm:$0xff]  ;;  %v4103_v54 = vcombine.high %v236_v48, %v240_v49  ;;  %v252_v63 = vld [vmem:[%s6130_s1 + $0x6d0] sm:$0xff] }
 0x108   :  { %2750 = vmatprep.subr.bf16.mxu1 %v4041_v52  ;;  %2657 = vmatprep.mubr.bf16.mxu0 %v4845_v23  ;;  %v241_v51 = vld [vmem:[%s6130_s1 + $0x678] sm:$0xff]  ;;  %v4094_v52 = vcombine.low %v228_v40, %v232_v41 }
 0x109   :  { %2780 = vmatprep.mubr.bf16.mxu1 %v4845_v23  ;;  %v197_v23 = vld [vmem:[%s6130_s1 + $0x518] sm:$0xff]  ;;  %v4105_v55 = vcombine.high %v237_v50, %v241_v51  ;;  %v4104_v57 = vcombine.low %v237_v50, %v241_v51  ;;  %v300_v51 = vld [vmem:[%s6130_s1 + $0x850] sm:$0xff] }
 0x10a   :  { %2628 = vmatpush1.bf16.msra.mxu0 %v4038_v58  ;;  %v4065_v10 = vcombine.high %v197_v23, %v201_v6  ;;  %v4064_v17 = vcombine.low %v197_v23, %v201_v6  ;;  %v248_v58 = vld [vmem:[%s6130_s1 + $0x6b0] sm:$0xff] }
 0x10b   :  { %2751 = vmatpush1.bf16.msra.mxu1 %v4040_v59  ;;  %2629 = vmatprep.subr.bf16.mxu0 %v4047_v60  ;;  %v245_v59 = vld [vmem:[%s6130_s1 + $0x698] sm:$0xff]  ;;  %v4111_v62 = vcombine.high %v244_v56, %v248_v58  ;;  %v260_v6 = vld [vmem:[%s6130_s1 + $0x710] sm:$0xff] }
 0x10c   :  { %2752 = vmatprep.subr.bf16.mxu1 %v4049_v61  ;;  %v249_v60 = vld [vmem:[%s6130_s1 + $0x6b8] sm:$0xff]  ;;  %v4102_v61 = vcombine.low %v236_v48, %v240_v49 }
 0x10d   :  { %v4113_v12 = vcombine.high %v245_v59, %v249_v60  ;;  %v4112_v4 = vcombine.low %v245_v59, %v249_v60  ;;  %v308_v60 = vld [vmem:[%s6130_s1 + $0x890] sm:$0xff] }
 0x10e   :  { %2630 = vmatpush1.bf16.msra.mxu0 %v4046_v0  ;;  %v256_v0 = vld [vmem:[%s6130_s1 + $0x6f0] sm:$0xff] }
 0x10f   :  { %2753 = vmatpush1.bf16.msra.mxu1 %v4048_v1  ;;  %2631 = vmatprep.subr.bf16.mxu0 %v4055_v2  ;;  %v253_v1 = vld [vmem:[%s6130_s1 + $0x6d8] sm:$0xff]  ;;  %v4119_v5 = vcombine.high %v252_v63, %v256_v0 }
 0x110   :  { %2754 = vmatprep.subr.bf16.mxu1 %v4057_v3  ;;  %v257_v2 = vld [vmem:[%s6130_s1 + $0x6f8] sm:$0xff]  ;;  %v4110_v3 = vcombine.low %v244_v56, %v248_v58 }
 0x111   :  { %v4121_v23 = vcombine.high %v253_v1, %v257_v2  ;;  %v4120_v11 = vcombine.low %v253_v1, %v257_v2  ;;  %v316_v2 = vld [vmem:[%s6130_s1 + $0x8d0] sm:$0xff] }
 0x112   :  { %2632 = vmatpush1.bf16.msra.mxu0 %v4054_v7  ;;  %v264_v7 = vld [vmem:[%s6130_s1 + $0x730] sm:$0xff] }
 0x113   :  { %2755 = vmatpush1.bf16.msra.mxu1 %v4056_v8  ;;  %2633 = vmatprep.subr.bf16.mxu0 %v4063_v9  ;;  %v261_v8 = vld [vmem:[%s6130_s1 + $0x718] sm:$0xff]  ;;  %v4127_v13 = vcombine.high %v260_v6, %v264_v7 }
 0x114   :  { %2756 = vmatprep.subr.bf16.mxu1 %v4065_v10  ;;  %v265_v9 = vld [vmem:[%s6130_s1 + $0x738] sm:$0xff]  ;;  %v4118_v10 = vcombine.low %v252_v63, %v256_v0 }
 0x115   :  { %v4129_v14 = vcombine.high %v261_v8, %v265_v9  ;;  %v4128_v20 = vcombine.low %v261_v8, %v265_v9  ;;  %v324_v8 = vld [vmem:[%s6130_s1 + $0x910] sm:$0xff] }
 0x116   :  { %2634 = vmatpush1.bf16.msra.mxu0 %v4062_v16  ;;  %v272_v16 = vld [vmem:[%s6130_s1 + $0x770] sm:$0xff] }
 0x117   :  { %2757 = vmatpush1.bf16.msra.mxu1 %v4064_v17  ;;  %2635 = vmatprep.subr.bf16.mxu0 %v4071_v18  ;;  %v269_v17 = vld [vmem:[%s6130_s1 + $0x758] sm:$0xff]  ;;  %v4135_v21 = vcombine.high %v268_v15, %v272_v16  ;;  %v328_v9 = vld [vmem:[%s6130_s1 + $0x930] sm:$0xff] }
 0x118   :  { %2758 = vmatprep.subr.bf16.mxu1 %v4073_v19  ;;  %v273_v18 = vld [vmem:[%s6130_s1 + $0x778] sm:$0xff]  ;;  %v4126_v19 = vcombine.low %v260_v6, %v264_v7 }
 0x119   :  { %v4137_v22 = vcombine.high %v269_v17, %v273_v18  ;;  %v4136_v30 = vcombine.low %v269_v17, %v273_v18  ;;  %v336_v17 = vld [vmem:[%s6130_s1 + $0x970] sm:$0xff]  ;;  %v333_v18 = vld [vmem:[%s6130_s1 + $0x958] sm:$0xff] }
 0x11a   :  { %2636 = vmatpush1.bf16.msra.mxu0 %v4070_v26  ;;  %v280_v26 = vld [vmem:[%s6130_s1 + $0x7b0] sm:$0xff] }
 0x11b   :  { %2759 = vmatpush1.bf16.msra.mxu1 %v4072_v27  ;;  %2637 = vmatprep.subr.bf16.mxu0 %v4079_v28  ;;  %v277_v27 = vld [vmem:[%s6130_s1 + $0x798] sm:$0xff]  ;;  %v4143_v31 = vcombine.high %v276_v24, %v280_v26 }
 0x11c   :  { %2760 = vmatprep.subr.bf16.mxu1 %v4081_v29  ;;  %v281_v28 = vld [vmem:[%s6130_s1 + $0x7b8] sm:$0xff]  ;;  %v4134_v29 = vcombine.low %v268_v15, %v272_v16  ;;  %v332_v16 = vld [vmem:[%s6130_s1 + $0x950] sm:$0xff] }
 0x11d   :  { %v4145_v32 = vcombine.high %v277_v27, %v281_v28  ;;  %v4144_v40 = vcombine.low %v277_v27, %v281_v28  ;;  %v344_v27 = vld [vmem:[%s6130_s1 + $0x9b0] sm:$0xff]  ;;  %v341_v28 = vld [vmem:[%s6130_s1 + $0x998] sm:$0xff] }
 0x11e   :  { %2638 = vmatpush1.bf16.msra.mxu0 %v4078_v35  ;;  %v288_v35 = vld [vmem:[%s6130_s1 + $0x7f0] sm:$0xff] }
 0x11f   :  { %2761 = vmatpush1.bf16.msra.mxu1 %v4080_v37  ;;  %2639 = vmatprep.subr.bf16.mxu0 %v4087_v38  ;;  %v285_v37 = vld [vmem:[%s6130_s1 + $0x7d8] sm:$0xff]  ;;  %v4151_v41 = vcombine.high %v284_v34, %v288_v35 }
 0x120   :  { %2762 = vmatprep.subr.bf16.mxu1 %v4089_v39  ;;  %v289_v38 = vld [vmem:[%s6130_s1 + $0x7f8] sm:$0xff]  ;;  %v4142_v39 = vcombine.low %v276_v24, %v280_v26  ;;  %v340_v26 = vld [vmem:[%s6130_s1 + $0x990] sm:$0xff] }
 0x121   :  { %v4153_v42 = vcombine.high %v285_v37, %v289_v38  ;;  %v4152_v48 = vcombine.low %v285_v37, %v289_v38  ;;  %v352_v37 = vld [vmem:[%s6130_s1 + $0x9f0] sm:$0xff]  ;;  %v349_v38 = vld [vmem:[%s6130_s1 + $0x9d8] sm:$0xff] }
 0x122   :  { %2640 = vmatpush1.bf16.msra.mxu0 %v4086_v44  ;;  %v296_v44 = vld [vmem:[%s6130_s1 + $0x830] sm:$0xff] }
 0x123   :  { %2763 = vmatpush1.bf16.msra.mxu1 %v4088_v45  ;;  %2641 = vmatprep.subr.bf16.mxu0 %v4095_v46  ;;  %v293_v45 = vld [vmem:[%s6130_s1 + $0x818] sm:$0xff]  ;;  %v4159_v49 = vcombine.high %v292_v43, %v296_v44 }
 0x124   :  { %2764 = vmatprep.subr.bf16.mxu1 %v4097_v47  ;;  %v297_v46 = vld [vmem:[%s6130_s1 + $0x838] sm:$0xff]  ;;  %v4150_v47 = vcombine.low %v284_v34, %v288_v35  ;;  %v348_v35 = vld [vmem:[%s6130_s1 + $0x9d0] sm:$0xff] }
 0x125   :  { %v4161_v50 = vcombine.high %v293_v45, %v297_v46  ;;  %v4160_v56 = vcombine.low %v293_v45, %v297_v46  ;;  %v360_v45 = vld [vmem:[%s6130_s1 + $0xa30] sm:$0xff]  ;;  %v357_v46 = vld [vmem:[%s6130_s1 + $0xa18] sm:$0xff] }
 0x126   :  { %2642 = vmatpush1.bf16.msra.mxu0 %v4094_v52  ;;  %v304_v52 = vld [vmem:[%s6130_s1 + $0x870] sm:$0xff] }
 0x127   :  { %2765 = vmatpush1.bf16.msra.mxu1 %v4096_v53  ;;  %2643 = vmatprep.subr.bf16.mxu0 %v4103_v54  ;;  %v301_v53 = vld [vmem:[%s6130_s1 + $0x858] sm:$0xff]  ;;  %v4167_v58 = vcombine.high %v300_v51, %v304_v52 }
 0x128   :  { %2766 = vmatprep.subr.bf16.mxu1 %v4105_v55  ;;  %v305_v54 = vld [vmem:[%s6130_s1 + $0x878] sm:$0xff]  ;;  %v4158_v55 = vcombine.low %v292_v43, %v296_v44  ;;  %v356_v44 = vld [vmem:[%s6130_s1 + $0xa10] sm:$0xff] }
 0x129   :  { %v4169_v59 = vcombine.high %v301_v53, %v305_v54  ;;  %v4168_v63 = vcombine.low %v301_v53, %v305_v54  ;;  %v368_v53 = vld [vmem:[%s6130_s1 + $0xa70] sm:$0xff]  ;;  %v365_v54 = vld [vmem:[%s6130_s1 + $0xa58] sm:$0xff] }
 0x12a   :  { %2644 = vmatpush1.bf16.msra.mxu0 %v4102_v61  ;;  %v312_v61 = vld [vmem:[%s6130_s1 + $0x8b0] sm:$0xff] }
 0x12b   :  { %2767 = vmatpush1.bf16.msra.mxu1 %v4104_v57  ;;  %2645 = vmatprep.subr.bf16.mxu0 %v4111_v62  ;;  %v309_v57 = vld [vmem:[%s6130_s1 + $0x898] sm:$0xff]  ;;  %v4175_v0 = vcombine.high %v308_v60, %v312_v61 }
 0x12c   :  { %2768 = vmatprep.subr.bf16.mxu1 %v4113_v12  ;;  %v313_v62 = vld [vmem:[%s6130_s1 + $0x8b8] sm:$0xff]  ;;  %v4166_v12 = vcombine.low %v300_v51, %v304_v52  ;;  %v364_v52 = vld [vmem:[%s6130_s1 + $0xa50] sm:$0xff] }
 0x12d   :  { %v4177_v1 = vcombine.high %v309_v57, %v313_v62 }
 0x12e   :  { %2646 = vmatpush1.bf16.msra.mxu0 %v4110_v3  ;;  %v320_v3 = vld [vmem:[%s6130_s1 + $0x8f0] sm:$0xff] }
 0x12f   :  { %2769 = vmatpush1.bf16.msra.mxu1 %v4112_v4  ;;  %2647 = vmatprep.subr.bf16.mxu0 %v4119_v5  ;;  %v321_v4 = vld [vmem:[%s6130_s1 + $0x8f8] sm:$0xff]  ;;  %v4174_v5 = vcombine.low %v308_v60, %v312_v61  ;;  %v4183_v6 = vcombine.high %v316_v2, %v320_v3  ;;  %v372_v61 = vld [vmem:[%s6130_s1 + $0xa90] sm:$0xff] }
 0x130   :  { %2770 = vmatprep.subr.bf16.mxu1 %v4121_v23  ;;  %v4176_v23 = vcombine.low %v309_v57, %v313_v62  ;;  %v376_v57 = vld [vmem:[%s6130_s1 + $0xab0] sm:$0xff]  ;;  %v373_v62 = vld [vmem:[%s6130_s1 + $0xa98] sm:$0xff] }
 0x132   :  { %2648 = vmatpush1.bf16.msra.mxu0 %v4118_v10  ;;  %v329_v10 = vld [vmem:[%s6130_s1 + $0x938] sm:$0xff] }
 0x133   :  { %2771 = vmatpush1.bf16.msra.mxu1 %v4120_v11  ;;  %2649 = vmatprep.subr.bf16.mxu0 %v4127_v13  ;;  %v4182_v11 = vcombine.low %v316_v2, %v320_v3  ;;  %v380_v3 = vld [vmem:[%s6130_s1 + $0xad0] sm:$0xff] }
 0x134   :  { %2772 = vmatprep.subr.bf16.mxu1 %v4129_v14  ;;  %v4191_v14 = vcombine.high %v324_v8, %v328_v9 }
 0x136   :  { %2650 = vmatpush1.bf16.msra.mxu0 %v4126_v19  ;;  %v337_v19 = vld [vmem:[%s6130_s1 + $0x978] sm:$0xff] }
 0x137   :  { %2773 = vmatpush1.bf16.msra.mxu1 %v4128_v20  ;;  %2651 = vmatprep.subr.bf16.mxu0 %v4135_v21  ;;  %v4190_v20 = vcombine.low %v324_v8, %v328_v9  ;;  %v4201_v24 = vcombine.high %v333_v18, %v337_v19  ;;  %v388_v9 = vld [vmem:[%s6130_s1 + $0xb10] sm:$0xff] }
 0x138   :  { %2774 = vmatprep.subr.bf16.mxu1 %v4137_v22  ;;  %v4199_v22 = vcombine.high %v332_v16, %v336_v17 }
 0x13a   :  { %2652 = vmatpush1.bf16.msra.mxu0 %v4134_v29  ;;  %v345_v29 = vld [vmem:[%s6130_s1 + $0x9b8] sm:$0xff] }
 0x13b   :  { %2775 = vmatpush1.bf16.msra.mxu1 %v4136_v30  ;;  %2653 = vmatprep.subr.bf16.mxu0 %v4143_v31  ;;  %v4198_v30 = vcombine.low %v332_v16, %v336_v17  ;;  %v4200_v31 = vcombine.low %v333_v18, %v337_v19  ;;  %v4209_v34 = vcombine.high %v341_v28, %v345_v29  ;;  %v396_v17 = vld [vmem:[%s6130_s1 + $0xb50] sm:$0xff]  ;;  %v397_v19 = vld [vmem:[%s6130_s1 + $0xb58] sm:$0xff] }
 0x13c   :  { %2776 = vmatprep.subr.bf16.mxu1 %v4145_v32  ;;  %v4207_v32 = vcombine.high %v340_v26, %v344_v27  ;;  %v400_v18 = vld [vmem:[%s6130_s1 + $0xb70] sm:$0xff] }
 0x13e   :  { %2654 = vmatpush1.bf16.msra.mxu0 %v4142_v39  ;;  %v353_v39 = vld [vmem:[%s6130_s1 + $0x9f8] sm:$0xff] }
 0x13f   :  { %2777 = vmatpush1.bf16.msra.mxu1 %v4144_v40  ;;  %2655 = vmatprep.subr.bf16.mxu0 %v4151_v41  ;;  %v4206_v40 = vcombine.low %v340_v26, %v344_v27  ;;  %v4208_v41 = vcombine.low %v341_v28, %v345_v29  ;;  %v4217_v43 = vcombine.high %v349_v38, %v353_v39  ;;  %v404_v27 = vld [vmem:[%s6130_s1 + $0xb90] sm:$0xff]  ;;  %v405_v29 = vld [vmem:[%s6130_s1 + $0xb98] sm:$0xff] }
 0x140   :  { %2778 = vmatprep.subr.bf16.mxu1 %v4153_v42  ;;  %v4215_v42 = vcombine.high %v348_v35, %v352_v37  ;;  %v408_v28 = vld [vmem:[%s6130_s1 + $0xbb0] sm:$0xff] }
 0x142   :  { %2656 = vmatpush1.bf16.msra.mxu0 %v4150_v47  ;;  %v361_v47 = vld [vmem:[%s6130_s1 + $0xa38] sm:$0xff] }
 0x143   :  { %2779 = vmatpush1.bf16.msra.mxu1 %v4152_v48  ;;  %2666 = vmatprep.subr.bf16.mxu0 %v4159_v49  ;;  %v4214_v48 = vcombine.low %v348_v35, %v352_v37  ;;  %v4216_v49 = vcombine.low %v349_v38, %v353_v39  ;;  %v4225_v51 = vcombine.high %v357_v46, %v361_v47  ;;  %v412_v37 = vld [vmem:[%s6130_s1 + $0xbd0] sm:$0xff]  ;;  %v413_v39 = vld [vmem:[%s6130_s1 + $0xbd8] sm:$0xff] }
 0x144   :  { %2789 = vmatprep.subr.bf16.mxu1 %v4161_v50  ;;  %v4223_v50 = vcombine.high %v356_v44, %v360_v45  ;;  %v416_v38 = vld [vmem:[%s6130_s1 + $0xbf0] sm:$0xff] }
 0x145   :  { %2658 = vmatmul.mubr.bf16.vlgmr.msra.gmra.mrb[4].mxu0 %v5040_v25 }
 0x146   :  { %2667 = vmatpush1.bf16.msra.mxu0 %v4158_v55  ;;  %2781 = vmatmul.mubr.bf16.vlgmr.msra.gmra.mrb[4].mxu1 %v5040_v25  ;;  %v317_v25 = vld [vmem:[%s6130_s1 + $0x8d8] sm:$0xff] }
 0x147   :  { %2790 = vmatpush1.bf16.msra.mxu1 %v4160_v56  ;;  %2668 = vmatprep.subr.bf16.mxu0 %v4167_v58  ;;  %v4185_v7 = vcombine.high %v317_v25, %v321_v4  ;;  %v4184_v13 = vcombine.low %v317_v25, %v321_v4  ;;  %v369_v55 = vld [vmem:[%s6130_s1 + $0xa78] sm:$0xff]  ;;  %v4222_v56 = vcombine.low %v356_v44, %v360_v45  ;;  %v384_v25 = vld [vmem:[%s6130_s1 + $0xaf0] sm:$0xff] }
 0x148   :  { %2791 = vmatprep.subr.bf16.mxu1 %v4169_v59  ;;  %2698 = vmatprep.mubr.bf16.mxu0 %v5051_v33  ;;  %v4224_v58 = vcombine.low %v357_v46, %v361_v47  ;;  %v4231_v59 = vcombine.high %v364_v52, %v368_v53  ;;  %v4233_v60 = vcombine.high %v365_v54, %v369_v55  ;;  %v381_v4 = vld [vmem:[%s6130_s1 + $0xad8] sm:$0xff]  ;;  %v4469_v47 = vld [vmem:[%s6132_s3 + $0x40] sm:$0xff]  }
 0x149   :  { %2821 = vmatprep.mubr.bf16.mxu1 %v5051_v33  ;;  %v325_v33 = vld [vmem:[%s6130_s1 + $0x918] sm:$0xff]  ;;  %v4278_v45 = vcombine.low %v412_v37, %v416_v38 }
 0x14a   :  { %2669 = vmatpush1.bf16.msra.mxu0 %v4166_v12  ;;  %v4193_v15 = vcombine.high %v325_v33, %v329_v10  ;;  %v4192_v21 = vcombine.low %v325_v33, %v329_v10  ;;  %v377_v12 = vld [vmem:[%s6130_s1 + $0xab8] sm:$0xff]  ;;  %v392_v33 = vld [vmem:[%s6130_s1 + $0xb30] sm:$0xff] }
 0x14b   :  { %2792 = vmatpush1.bf16.msra.mxu1 %v4168_v63  ;;  %2670 = vmatprep.subr.bf16.mxu0 %v4175_v0  ;;  %v4230_v63 = vcombine.low %v364_v52, %v368_v53  ;;  %v4232_v0 = vcombine.low %v365_v54, %v369_v55  ;;  %v4241_v2 = vcombine.high %v373_v62, %v377_v12  ;;  %v389_v10 = vld [vmem:[%s6130_s1 + $0xb18] sm:$0xff]  ;;  %v4474_v52 = vld [vmem:[%s6132_s3 + $0xc8] sm:$0xff]   ;;  %v4477_v55 = vld [vmem:[%s6132_s3 + $0x50] sm:$0xff]  }
 0x14c   :  { %2793 = vmatprep.subr.bf16.mxu1 %v4177_v1  ;;  %v4239_v1 = vcombine.high %v372_v61, %v376_v57  ;;  %v4475_v53 = vld [vmem:[%s6132_s3 + $0x8] sm:$0xff]  }
 0x14d   :  { %v4476_v54 = vld [vmem:[%s6132_s3 + $0x88] sm:$0xff]  }
 0x14e   :  { %2671 = vmatpush1.bf16.msra.mxu0 %v4174_v5  ;;  %v385_v5 = vld [vmem:[%s6130_s1 + $0xaf8] sm:$0xff] }
 0x14f   :  { %2794 = vmatpush1.bf16.msra.mxu1 %v4176_v23  ;;  %2672 = vmatprep.subr.bf16.mxu0 %v4183_v6  ;;  %v4238_v23 = vcombine.low %v372_v61, %v376_v57  ;;  %v4240_v6 = vcombine.low %v373_v62, %v377_v12  ;;  %v4249_v8 = vcombine.high %v381_v4, %v385_v5  ;;  %v4483_v61 = vld [vmem:[%s6132_s3 + $0x18] sm:$0xff]   ;;  %v4485_v62 = vld [vmem:[%s6132_s3 + $0x60] sm:$0xff]  }
 0x150   :  { %2795 = vmatprep.subr.bf16.mxu1 %v4185_v7  ;;  %v4247_v7 = vcombine.high %v380_v3, %v384_v25  ;;  %v4484_v57 = vld [vmem:[%s6132_s3 + $0x98] sm:$0xff]   ;;  %v4486_v12 = vld [vmem:[%s6132_s3 + $0xe0] sm:$0xff]  }
 0x152   :  { %2673 = vmatpush1.bf16.msra.mxu0 %v4182_v11  ;;  %v393_v11 = vld [vmem:[%s6130_s1 + $0xb38] sm:$0xff] }
 0x153   :  { %2796 = vmatpush1.bf16.msra.mxu1 %v4184_v13  ;;  %2674 = vmatprep.subr.bf16.mxu0 %v4191_v14  ;;  %v4246_v13 = vcombine.low %v380_v3, %v384_v25  ;;  %v4248_v14 = vcombine.low %v381_v4, %v385_v5  ;;  %v4257_v16 = vcombine.high %v389_v10, %v393_v11  ;;  %v4491_v3 = vld [vmem:[%s6132_s3 + $0x28] sm:$0xff]   ;;  %v4493_v4 = vld [vmem:[%s6132_s3 + $0x70] sm:$0xff]  }
 0x154   :  { %2797 = vmatprep.subr.bf16.mxu1 %v4193_v15  ;;  %v4255_v15 = vcombine.high %v388_v9, %v392_v33  ;;  %v4492_v25 = vld [vmem:[%s6132_s3 + $0xa8] sm:$0xff]  }
 0x156   :  { %2675 = vmatpush1.bf16.msra.mxu0 %v4190_v20  ;;  %v401_v20 = vld [vmem:[%s6130_s1 + $0xb78] sm:$0xff] }
 0x157   :  { %2798 = vmatpush1.bf16.msra.mxu1 %v4192_v21  ;;  %2676 = vmatprep.subr.bf16.mxu0 %v4199_v22  ;;  %v4254_v21 = vcombine.low %v388_v9, %v392_v33  ;;  %v4256_v22 = vcombine.low %v389_v10, %v393_v11  ;;  %v4265_v26 = vcombine.high %v397_v19, %v401_v20 }
 0x158   :  { %2799 = vmatprep.subr.bf16.mxu1 %v4201_v24  ;;  %v4263_v24 = vcombine.high %v396_v17, %v400_v18 }
 0x15a   :  { %2677 = vmatpush1.bf16.msra.mxu0 %v4198_v30  ;;  %v409_v30 = vld [vmem:[%s6130_s1 + $0xbb8] sm:$0xff] }
 0x15b   :  { %2800 = vmatpush1.bf16.msra.mxu1 %v4200_v31  ;;  %2678 = vmatprep.subr.bf16.mxu0 %v4207_v32  ;;  %v4262_v31 = vcombine.low %v396_v17, %v400_v18  ;;  %v4264_v32 = vcombine.low %v397_v19, %v401_v20  ;;  %v4273_v35 = vcombine.high %v405_v29, %v409_v30  ;;  %v4496_v18 = vld [vmem:[%s6132_s3 + $0xb0] sm:$0xff]   ;;  %v4497_v19 = vld [vmem:[%s6132_s3 + $0x78] sm:$0xff]  }
 0x15c   :  { %2801 = vmatprep.subr.bf16.mxu1 %v4209_v34  ;;  %v4271_v34 = vcombine.high %v404_v27, %v408_v28 }
 0x15e   :  { %2679 = vmatpush1.bf16.msra.mxu0 %v4206_v40  ;;  %v417_v40 = vld [vmem:[%s6130_s1 + $0xbf8] sm:$0xff] }
 0x15f   :  { %2802 = vmatpush1.bf16.msra.mxu1 %v4208_v41  ;;  %2680 = vmatprep.subr.bf16.mxu0 %v4215_v42  ;;  %v4270_v41 = vcombine.low %v404_v27, %v408_v28  ;;  %v4272_v42 = vcombine.low %v405_v29, %v409_v30  ;;  %v4281_v44 = vcombine.high %v413_v39, %v417_v40  ;;  %v4499_v30 = vld [vmem:[%s6132_s3 + $0x38] sm:$0xff]  }
 0x160   :  { %2803 = vmatprep.subr.bf16.mxu1 %v4217_v43  ;;  %v4279_v43 = vcombine.high %v412_v37, %v416_v38  ;;  %v4280_v46 = vcombine.low %v413_v39, %v417_v40 }
 0x162   :  { %2681 = vmatpush1.bf16.msra.mxu0 %v4214_v48  ;;  %v4470_v48 = vld [vmem:[%s6132_s3 + $0xc0] sm:$0xff]  }
 0x163   :  { %2804 = vmatpush1.bf16.msra.mxu1 %v4216_v49  ;;  %2682 = vmatprep.subr.bf16.mxu0 %v4223_v50  ;;  %v4471_v49 = vld [vmem:[%s6132_s3] sm:$0xff]  }
 0x164   :  { %2805 = vmatprep.subr.bf16.mxu1 %v4225_v51  ;;  %v4472_v50 = vld [vmem:[%s6132_s3 + $0x80] sm:$0xff]   ;;  %v4473_v51 = vld [vmem:[%s6132_s3 + $0x48] sm:$0xff]  }
 0x166   :  { %2683 = vmatpush1.bf16.msra.mxu0 %v4222_v56  ;;  %v4479_v56 = vld [vmem:[%s6132_s3 + $0x10] sm:$0xff]  }
 0x167   :  { %2806 = vmatpush1.bf16.msra.mxu1 %v4224_v58  ;;  %2684 = vmatprep.subr.bf16.mxu0 %v4231_v59  ;;  %v4480_v58 = vld [vmem:[%s6132_s3 + $0x90] sm:$0xff]   ;;  %v4481_v59 = vld [vmem:[%s6132_s3 + $0x58] sm:$0xff]  }
 0x168   :  { %2807 = vmatprep.subr.bf16.mxu1 %v4233_v60  ;;  %v4482_v60 = vld [vmem:[%s6132_s3 + $0xd8] sm:$0xff]  }
 0x16a   :  { %2685 = vmatpush1.bf16.msra.mxu0 %v4230_v63  ;;  %v4487_v63 = vld [vmem:[%s6132_s3 + $0x20] sm:$0xff]  }
 0x16b   :  { %2808 = vmatpush1.bf16.msra.mxu1 %v4232_v0  ;;  %2686 = vmatprep.subr.bf16.mxu0 %v4239_v1  ;;  %v4488_v0 = vld [vmem:[%s6132_s3 + $0xa0] sm:$0xff]   ;;  %v4489_v1 = vld [vmem:[%s6132_s3 + $0x68] sm:$0xff]  }
 0x16c   :  { %2809 = vmatprep.subr.bf16.mxu1 %v4241_v2  ;;  %v4490_v2 = vld [vmem:[%s6132_s3 + $0xe8] sm:$0xff]  }
 0x16e   :  { %2687 = vmatpush1.bf16.msra.mxu0 %v4238_v23  ;;  %v4494_v23 = vld [vmem:[%s6132_s3 + $0xf0] sm:$0xff]  }
 0x16f   :  { %2810 = vmatpush1.bf16.msra.mxu1 %v4240_v6  ;;  %2688 = vmatprep.subr.bf16.mxu0 %v4247_v7 }
 0x170   :  { %2811 = vmatprep.subr.bf16.mxu1 %v4249_v8 }
 0x172   :  { %2689 = vmatpush1.bf16.msra.mxu0 %v4246_v13  ;;  %v4495_v13 = vld [vmem:[%s6132_s3 + $0x30] sm:$0xff]  }
 0x173   :  { %2812 = vmatpush1.bf16.msra.mxu1 %v4248_v14  ;;  %2690 = vmatprep.subr.bf16.mxu0 %v4255_v15 }
 0x174   :  { %2813 = vmatprep.subr.bf16.mxu1 %v4257_v16 }
 0x176   :  { %2691 = vmatpush1.bf16.msra.mxu0 %v4254_v21 }
 0x177   :  { %2814 = vmatpush1.bf16.msra.mxu1 %v4256_v22  ;;  %2692 = vmatprep.subr.bf16.mxu0 %v4263_v24  ;;  %v4498_v24 = vld [vmem:[%s6132_s3 + $0xf8] sm:$0xff]  }
 0x178   :  { %2815 = vmatprep.subr.bf16.mxu1 %v4265_v26 }
 0x17a   :  { %2693 = vmatpush1.bf16.msra.mxu0 %v4262_v31 }
 0x17b   :  { %2816 = vmatpush1.bf16.msra.mxu1 %v4264_v32  ;;  %2694 = vmatprep.subr.bf16.mxu0 %v4271_v34  ;;  %v4500_v34 = vld [vmem:[%s6132_s3 + $0xb8] sm:$0xff]  }
 0x17c   :  { %2817 = vmatprep.subr.bf16.mxu1 %v4273_v35 }
 0x17e   :  { %2695 = vmatpush1.bf16.msra.mxu0 %v4270_v41 }
 0x17f   :  { %2818 = vmatpush1.bf16.msra.mxu1 %v4272_v42  ;;  %2696 = vmatprep.subr.bf16.mxu0 %v4279_v43 }
 0x180   :  { %2819 = vmatprep.subr.bf16.mxu1 %v4281_v44 }
 0x182   :  { %2697 = vmatpush1.bf16.msra.mxu0 %v4278_v45 }
 0x183   :  { %2820 = vmatpush1.bf16.msra.mxu1 %v4280_v46  ;;  %4347 = vmatprep.subr.bf16.mxu0 %v4469_v47 }
 0x184   :  { %4369 = vmatprep.subr.bf16.mxu1 %v4470_v48 }
 0x185   :  { %2699 = vmatmul.mubr.bf16.vlgmr.msra.gmra.mrb[4].mxu0 %v5237_v36 }
 0x186   :  { %2822 = vmatmul.mubr.bf16.vlgmr.msra.gmra.mrb[4].mxu1 %v5237_v36  ;;  %4348 = vmatpush3.bf16.msra.mxu0 %v4471_v49  ;;  %v4478_v36 = vld [vmem:[%s6132_s3 + $0xd0] sm:$0xff]  }
 0x187   :  { %4370 = vmatpush3.bf16.msra.mxu1 %v4472_v50  ;;  %4349 = vmatprep.subr.bf16.mxu0 %v4473_v51 }
 0x188   :  { %4371 = vmatprep.subr.bf16.mxu1 %v4474_v52 }
 0x18a   :  { %4350 = vmatpush3.bf16.msra.mxu0 %v4475_v53 }
 0x18b   :  { %4372 = vmatpush3.bf16.msra.mxu1 %v4476_v54  ;;  %4351 = vmatprep.subr.bf16.mxu0 %v4477_v55 }
 0x18c   :  { %4373 = vmatprep.subr.bf16.mxu1 %v4478_v36 }
 0x18e   :  { %4352 = vmatpush3.bf16.msra.mxu0 %v4479_v56 }
 0x18f   :  { %4374 = vmatpush3.bf16.msra.mxu1 %v4480_v58  ;;  %4353 = vmatprep.subr.bf16.mxu0 %v4481_v59 }
 0x190   :  { %4375 = vmatprep.subr.bf16.mxu1 %v4482_v60 }
 0x192   :  { %4354 = vmatpush3.bf16.msra.mxu0 %v4483_v61 }
 0x193   :  { %4376 = vmatpush3.bf16.msra.mxu1 %v4484_v57  ;;  %4355 = vmatprep.subr.bf16.mxu0 %v4485_v62 }
 0x194   :  { %4377 = vmatprep.subr.bf16.mxu1 %v4486_v12 }
 0x196   :  { %4356 = vmatpush3.bf16.msra.mxu0 %v4487_v63 }
 0x197   :  { %4378 = vmatpush3.bf16.msra.mxu1 %v4488_v0  ;;  %4357 = vmatprep.subr.bf16.mxu0 %v4489_v1 }
 0x198   :  { %v2454_v5 = vpop.f32.mrb[0].mxu0  ;;  %4379 = vmatprep.subr.bf16.mxu1 %v4490_v2 }
 0x199   :  { %v2830_v6 = vrot.slane %v2454_v5, 4  ;;  %v2577_v7 = vpop.f32.mrb[0].mxu1  ;;  %v2456_v8 = vpop.f32.mrb[1].mxu0 }
 0x19a   :  { %v2842_v9 = vrot.slane %v2577_v7, 4  ;;  %v2836_v33 = vrot.slane %v2456_v8, 4  ;;  %v2579_v10 = vpop.f32.mrb[1].mxu1  ;;  %v2458_v11 = vpop.f32.mrb[2].mxu0  ;;  %4358 = vmatpush3.bf16.msra.mxu0 %v4491_v3 }
 0x19b   :  { %v2831_v14 = vadd.f32 %v2830_v6, %v2454_v5  ;;  %v2848_v15 = vrot.slane %v2579_v10, 4  ;;  %v2581_v16 = vpop.f32.mrb[2].mxu1  ;;  %v2459_v17 = vpop.f32.mrb[3].mxu0  ;;  %4380 = vmatpush3.bf16.msra.mxu1 %v4492_v25  ;;  %4359 = vmatprep.subr.bf16.mxu0 %v4493_v4 }
 0x19c   :  { %v2843_v20 = vadd.f32 %v2842_v9, %v2577_v7  ;;  %v2837_v21 = vadd.f32 %v2836_v33, %v2456_v8  ;;  %v2582_v22 = vpop.f32.mrb[3].mxu1  ;;  %4381 = vmatprep.subr.bf16.mxu1 %v4494_v23 }
 0x19d   :  { %v2832_v26 = vrot.slane %v2831_v14, 2  ;;  %v2849_v27 = vadd.f32 %v2848_v15, %v2579_v10 }
 0x19e   :  { %v2844_v28 = vrot.slane %v2843_v20, 2  ;;  %v2838_v29 = vrot.slane %v2837_v21, 2  ;;  %4360 = vmatpush3.bf16.msra.mxu0 %v4495_v13 }
 0x19f   :  { %v2833_v31 = vadd.f32 %v2832_v26, %v2831_v14  ;;  %v2850_v32 = vrot.slane %v2849_v27, 2  ;;  %4382 = vmatpush3.bf16.msra.mxu1 %v4496_v18  ;;  %4361 = vmatprep.subr.bf16.mxu0 %v4497_v19 }
 0x1a0   :  { %v2845_v35 = vadd.f32 %v2844_v28, %v2843_v20  ;;  %v2839_v37 = vadd.f32 %v2838_v29, %v2837_v21  ;;  %4383 = vmatprep.subr.bf16.mxu1 %v4498_v24  ;;  %v4573_v24 = vmov 1983009808  }
 0x1a1   :  { %v2834_v38 = vrot.slane %v2833_v31, 1  ;;  %v2851_v39 = vadd.f32 %v2850_v32, %v2849_v27  ;;  %v2988_v26 = vunpack.c.l.s4 %v4573_v24  ;;  %v2990_v27 = vlaneseq  ;;  %v4508_v24 = vld [vmem:[%s6132_s3 + $0x188] sm:$0xff]  }
 0x1a2   :  { %v2846_v40 = vrot.slane %v2845_v35, 1  ;;  %v2840_v41 = vrot.slane %v2839_v37, 1  ;;  %4362 = vmatpush3.bf16.msra.mxu0 %v4499_v30 }
 0x1a3   :  { %v2835_v42 = vadd.f32 %v2834_v38, %v2833_v31  ;;  %v2852_v43 = vrot.slane %v2851_v39, 1  ;;  %4384 = vmatpush3.bf16.msra.mxu1 %v4500_v34  ;;  %v2989_v28 = vunpack.c.0.s8 %v2988_v26  ;;  %v5923_v29 = vshrl.u32 %v2990_v27, 7  ;;  %v4509_v26 = vld [vmem:[%s6132_s3 + $0x150] sm:$0xff]  }
 0x1a4   :  { %v2847_v44 = vadd.f32 %v2846_v40, %v2845_v35  ;;  %v2841_v45 = vadd.f32 %v2840_v41, %v2839_v37  ;;  %v4510_v27 = vld [vmem:[%s6132_s3 + $0x1d0] sm:$0xff]  }
 0x1a5   :  { %v2879_v46 = vmul.f32 0.125, %v2835_v42  ;;  %v2853_v47 = vadd.f32 %v2852_v43, %v2851_v39  ;;  %v5926_v32 = vsub.s32 %v2989_v28, %v5923_v29  ;;  %v5929_v39 = vsub.s32 1, %v5923_v29  ;;  %v4511_v28 = vld [vmem:[%s6132_s3 + $0x110] sm:$0xff]  }
 0x1a6   :  { %v2881_v48 = vmul.f32 0.125, %v2847_v44  ;;  %v2880_v49 = vmul.f32 0.125, %v2841_v45  ;;  %v3113_v41 = vsub.s32 3, %v5923_v29  ;;  %v3121_v42 = vsub.s32 7, %v5923_v29  ;;  %v2959_v45 = vld [vmem:[%s6131_s2] sm:$0xff] }
 0x1a7   :  { %v5907_v50 = vsub.f32 %v2454_v5, %v2879_v46  ;;  %v2882_v51 = vmul.f32 0.125, %v2853_v47  ;;  %v3117_v43 = vsub.s32 5, %v5923_v29  ;;  %v5940_v46 = vsub.s32 0, %v5923_v29 }
 0x1a8   :  { %v5909_v52 = vsub.f32 %v2577_v7, %v2881_v48  ;;  %v5911_v53 = vsub.f32 %v2456_v8, %v2880_v49  ;;  %v3039_v48 = vsub.s32 6, %v5923_v29  ;;  %v3031_v49 = vsub.s32 2, %v5923_v29 }
 0x1a9   :  { %v2895_v54 = vmul.f32 %v5907_v50, %v5907_v50  ;;  %v5915_v55 = vsub.f32 %v2579_v10, %v2882_v51  ;;  %v3035_v51 = vsub.s32 4, %v5923_v29 }
 0x1aa   :  { %v2897_v36 = vmul.f32 %v5909_v52, %v5909_v52  ;;  %v2896_v56 = vmul.f32 %v5911_v53, %v5911_v53 }
 0x1ab   :  { %v2903_v58 = vrot.slane %v2895_v54, 4  ;;  %v2898_v59 = vmul.f32 %v5915_v55, %v5915_v55 }
 0x1ac   :  { %v2915_v60 = vrot.slane %v2897_v36, 4  ;;  %v2909_v61 = vrot.slane %v2896_v56, 4 }
 0x1ad   :  { %v2904_v57 = vadd.f32 %v2903_v58, %v2895_v54  ;;  %v2921_v62 = vrot.slane %v2898_v59, 4  ;;  %v3114_v54 = vrot.slane %v2959_v45, %v3113_v41  ;;  %v3118_v58 = vrot.slane %v2959_v45, %v3117_v43 }
 0x1ae   :  { %v2916_v12 = vadd.f32 %v2915_v60, %v2897_v36  ;;  %v2910_v63 = vadd.f32 %v2909_v61, %v2896_v56  ;;  %v3122_v36 = vrot.slane %v2959_v45, %v3121_v42  ;;  %v3110_v56 = vrot.slane %v2959_v45, %v5929_v39 }
 0x1af   :  { %v2905_v0 = vrot.slane %v2904_v57, 2  ;;  %v2922_v1 = vadd.f32 %v2921_v62, %v2898_v59 }
 0x1b0   :  { %v2917_v2 = vrot.slane %v2916_v12, 2  ;;  %v2911_v3 = vrot.slane %v2910_v63, 2 }
 0x1b1   :  { %v2906_v25 = vadd.f32 %v2905_v0, %v2904_v57  ;;  %v2923_v4 = vrot.slane %v2922_v1, 2  ;;  %v3150_v0 = vrot.slane %v3110_v56, %v5929_v39  ;;  %v4524_v56 = vld [vmem:[%s6132_s3 + $0x1a8] sm:$0xff]  }
 0x1b2   :  { %v2918_v5 = vadd.f32 %v2917_v2, %v2916_v12  ;;  %v2912_v23 = vadd.f32 %v2911_v3, %v2910_v63  ;;  %v3154_v12 = vrot.slane %v3114_v54, %v5929_v39  ;;  %v3162_v63 = vrot.slane %v3122_v36, %v5929_v39  ;;  %v4522_v54 = vld [vmem:[%s6132_s3 + $0x1e8] sm:$0xff]  }
 0x1b3   :  { %v2907_v6 = vrot.slane %v2906_v25, 1  ;;  %v2924_v7 = vadd.f32 %v2923_v4, %v2922_v1  ;;  %v3158_v1 = vrot.slane %v3118_v58, %v5929_v39  ;;  %v4523_v36 = vld [vmem:[%s6132_s3 + $0x128] sm:$0xff]   ;;  %v4525_v58 = vld [vmem:[%s6132_s3 + $0x170] sm:$0xff]  }
 0x1b4   :  { %v2919_v8 = vrot.slane %v2918_v5, 1  ;;  %v2913_v9 = vrot.slane %v2912_v23, 1 }
 0x1b5   :  { %v2908_v33 = vadd.f32 %v2907_v6, %v2906_v25  ;;  %v2925_v10 = vrot.slane %v2924_v7, 1 }
 0x1b6   :  { %v2920_v11 = vadd.f32 %v2919_v8, %v2918_v5  ;;  %v2914_v13 = vadd.f32 %v2913_v9, %v2912_v23 }
 0x1b7   :  { %v2951_v14 = vmul.f32 0.125, %v2908_v33  ;;  %v2926_v15 = vadd.f32 %v2925_v10, %v2924_v7 }
 0x1b8   :  { %v2953_v16 = vmul.f32 0.125, %v2920_v11  ;;  %v2952_v17 = vmul.f32 0.125, %v2914_v13 }
 0x1b9   :  { %v2961_v18 = vadd.f32 1e-05, %v2951_v14  ;;  %v2954_v19 = vmul.f32 0.125, %v2926_v15 }
 0x1ba   :  { %v2963_v20 = vadd.f32 1e-05, %v2953_v16  ;;  %v2962_v21 = vadd.f32 1e-05, %v2952_v17 }
 0x1bb   :  { %4533 = vrsqrt.f32 %v2961_v18  ;;  %v2964_v22 = vadd.f32 1e-05, %v2954_v19 }
 0x1bc   :  { %4535 = vrsqrt.f32 %v2963_v20  ;;  %v4505_v20 = vld [vmem:[%s6132_s3 + $0x148] sm:$0xff]  }
 0x1bd   :  { %4537 = vrsqrt.f32 %v2962_v21  ;;  %v4506_v21 = vld [vmem:[%s6132_s3 + $0x1c8] sm:$0xff]  }
 0x1be   :  { %4539 = vrsqrt.f32 %v2964_v22  ;;  %v4507_v22 = vld [vmem:[%s6132_s3 + $0x108] sm:$0xff]  }
 0x1c5   :  { %v4534_v30 = vpop.eup %4533 }
 0x1c6   :  { %v4536_v31 = vpop.eup %4535 }
 0x1c7   :  { %v4538_v34 = vpop.eup %4537 }
 0x1c8   :  { %v4540_v35 = vpop.eup %4539  ;;  %v2985_v37 = vcombine.low %v4534_v30, %v4538_v34  ;;  %v4512_v30 = vld [vmem:[%s6132_s3 + $0x190] sm:$0xff]   ;;  %v4514_v34 = vld [vmem:[%s6132_s3 + $0x1d8] sm:$0xff]  }
 0x1c9   :  { %v2986_v38 = vcombine.low %v4536_v31, %v4540_v35  ;;  %v4513_v31 = vld [vmem:[%s6132_s3 + $0x158] sm:$0xff]  }
 0x1ca   :  { %v2993_v40 = vrot.slane %v2985_v37, %v5926_v32  ;;  %v4515_v35 = vld [vmem:[%s6132_s3 + $0x118] sm:$0xff]  }
 0x1cb   :  { %v3000_v44 = vrot.slane %v2986_v38, %v5926_v32  ;;  %v4516_v37 = vld [vmem:[%s6132_s3 + $0x198] sm:$0xff]   ;;  %v4517_v38 = vld [vmem:[%s6132_s3 + $0x160] sm:$0xff]  }
 0x1cd   :  { %v3001_v47 = vcombine.low %v2993_v40, %v3000_v44  ;;  %v4518_v40 = vld [vmem:[%s6132_s3 + $0x1e0] sm:$0xff]  }
 0x1ce   :  { %v4519_v44 = vld [vmem:[%s6132_s3 + $0x120] sm:$0xff]  }
 0x1cf   :  { %v3021_v59 = vmul.f32 %v3001_v47, %v2959_v45  ;;  %v4520_v45 = vld [vmem:[%s6132_s3 + $0x1a0] sm:$0xff]   ;;  %v4521_v47 = vld [vmem:[%s6132_s3 + $0x168] sm:$0xff]  }
 0x1d1   :  { %v3040_v60 = vrot.slane %v3021_v59, %v3039_v48  ;;  %v3032_v61 = vrot.slane %v3021_v59, %v3031_v49  ;;  %v3028_v57 = vrot.slane %v3021_v59, %v5940_v46  ;;  %v3036_v62 = vrot.slane %v3021_v59, %v3035_v51  ;;  %v4526_v59 = vld [vmem:[%s6132_s3 + $0x1f0] sm:$0xff]  }
 0x1d3   :  { %v3080_v2 = vrot.slane %v3040_v60, %v5940_v46  ;;  %v3072_v3 = vrot.slane %v3032_v61, %v5940_v46  ;;  %v3068_v25 = vrot.slane %v3028_v57, %v5940_v46  ;;  %v3076_v4 = vrot.slane %v3036_v62, %v5940_v46  ;;  %v4527_v60 = vld [vmem:[%s6132_s3 + $0x130] sm:$0xff]   ;;  %v4529_v57 = vld [vmem:[%s6132_s3 + $0x178] sm:$0xff]  }
 0x1d4   :  { %v4528_v61 = vld [vmem:[%s6132_s3 + $0x1b0] sm:$0xff]   ;;  %v4530_v62 = vld [vmem:[%s6132_s3 + $0x1f8] sm:$0xff]  }
 0x1d5   :  { %v3100_v5 = vmul.f32 %v3080_v2, %v5915_v55  ;;  %v3098_v23 = vmul.f32 %v3072_v3, %v5911_v53  ;;  %v3097_v6 = vmul.f32 %v3068_v25, %v5907_v50  ;;  %v3099_v7 = vmul.f32 %v3076_v4, %v5909_v52  ;;  %v4501_v50 = vld [vmem:[%s6132_s3 + $0x140] sm:$0xff]  }
 0x1d6   :  { %v4502_v52 = vld [vmem:[%s6132_s3 + $0x1c0] sm:$0xff]   ;;  %4391 = vmatprep.subr.bf16.mxu0 %v4501_v50 }
 0x1d7   :  { %v3180_v8 = vadd.f32 %v3154_v12, %v3098_v23  ;;  %v3182_v9 = vadd.f32 %v3162_v63, %v3100_v5  ;;  %v3179_v33 = vadd.f32 %v3150_v0, %v3097_v6  ;;  %v3181_v10 = vadd.f32 %v3158_v1, %v3099_v7  ;;  %v4503_v53 = vld [vmem:[%s6132_s3 + $0x100] sm:$0xff]   ;;  %4413 = vmatprep.subr.bf16.mxu1 %v4502_v52  ;;  %v4531_v12 = vld [vmem:[%s6132_s3 + $0x138] sm:$0xff]  }
 0x1d8   :  { %v4504_v55 = vld [vmem:[%s6132_s3 + $0x180] sm:$0xff]   ;;  %v4532_v63 = vld [vmem:[%s6132_s3 + $0x1b8] sm:$0xff]  }
 0x1d9   :  { %v3188_v11 = vmax.f32 %v3180_v8, 0.0  ;;  %v3190_v13 = vmax.f32 %v3182_v9, 0.0  ;;  %v3187_v14 = vmax.f32 %v3179_v33, 0.0  ;;  %v3189_v15 = vmax.f32 %v3181_v10, 0.0 }
 0x1db   :  { %v3196_v16 = vpack.c.bf16 %v3188_v11, %v3188_v11  ;;  %v3198_v17 = vpack.c.bf16 %v3190_v13, %v3190_v13  ;;  %v3195_v18 = vpack.c.bf16 %v3187_v14, %v3187_v14  ;;  %v3197_v19 = vpack.c.bf16 %v3189_v15, %v3189_v15 }
 0x1dd   :  { %3754 = vmatprep.mubr.bf16.mxu0 %v3196_v16  ;;  %3794 = vmatprep.mubr.bf16.mxu1 %v3198_v17 }
 0x1de   :  { %3755 = vmatmul.mubr.bf16.vlgmr.msra.gmra.mrb[8].mxu0 %v3195_v18  ;;  %3795 = vmatmul.mubr.bf16.vlgmr.msra.gmra.mrb[8].mxu1 %v3197_v19 }
 0x1df   :  { %4392 = vmatpush3.bf16.msra.mxu0 %v4503_v53  ;;  %4414 = vmatpush3.bf16.msra.mxu1 %v4504_v55 }
 0x1e0   :  { %4393 = vmatprep.subr.bf16.mxu0 %v4505_v20  ;;  %4415 = vmatprep.subr.bf16.mxu1 %v4506_v21 }
 0x1e3   :  { %4394 = vmatpush3.bf16.msra.mxu0 %v4507_v22  ;;  %4416 = vmatpush3.bf16.msra.mxu1 %v4508_v24 }
 0x1e4   :  { %4395 = vmatprep.subr.bf16.mxu0 %v4509_v26  ;;  %4417 = vmatprep.subr.bf16.mxu1 %v4510_v27 }
 0x1e7   :  { %4396 = vmatpush3.bf16.msra.mxu0 %v4511_v28  ;;  %4418 = vmatpush3.bf16.msra.mxu1 %v4512_v30 }
 0x1e8   :  { %4397 = vmatprep.subr.bf16.mxu0 %v4513_v31  ;;  %4419 = vmatprep.subr.bf16.mxu1 %v4514_v34 }
 0x1eb   :  { %4398 = vmatpush3.bf16.msra.mxu0 %v4515_v35  ;;  %4420 = vmatpush3.bf16.msra.mxu1 %v4516_v37 }
 0x1ec   :  { %4399 = vmatprep.subr.bf16.mxu0 %v4517_v38  ;;  %4421 = vmatprep.subr.bf16.mxu1 %v4518_v40 }
 0x1ef   :  { %4400 = vmatpush3.bf16.msra.mxu0 %v4519_v44  ;;  %4422 = vmatpush3.bf16.msra.mxu1 %v4520_v45 }
 0x1f0   :  { %4401 = vmatprep.subr.bf16.mxu0 %v4521_v47  ;;  %4423 = vmatprep.subr.bf16.mxu1 %v4522_v54 }
 0x1f3   :  { %4402 = vmatpush3.bf16.msra.mxu0 %v4523_v36  ;;  %4424 = vmatpush3.bf16.msra.mxu1 %v4524_v56 }
 0x1f4   :  { %4403 = vmatprep.subr.bf16.mxu0 %v4525_v58  ;;  %4425 = vmatprep.subr.bf16.mxu1 %v4526_v59 }
 0x1f7   :  { %4404 = vmatpush3.bf16.msra.mxu0 %v4527_v60  ;;  %4426 = vmatpush3.bf16.msra.mxu1 %v4528_v61 }
 0x1f8   :  { %4405 = vmatprep.subr.bf16.mxu0 %v4529_v57  ;;  %4427 = vmatprep.subr.bf16.mxu1 %v4530_v62 }
 0x1fb   :  { %4406 = vmatpush3.bf16.msra.mxu0 %v4531_v12  ;;  %4428 = vmatpush3.bf16.msra.mxu1 %v4532_v63 }
 0x258   :  { %v2700_v0 = vpop.f32.mrb[4].mxu0 }
 0x259   :  { %v2854_v1 = vrot.slane %v2700_v0, 4  ;;  %v2823_v2 = vpop.f32.mrb[4].mxu1  ;;  %v2702_v3 = vpop.f32.mrb[5].mxu0 }
 0x25a   :  { %v2866_v25 = vrot.slane %v2823_v2, 4  ;;  %v2860_v4 = vrot.slane %v2702_v3, 4  ;;  %v2825_v5 = vpop.f32.mrb[5].mxu1  ;;  %v2704_v23 = vpop.f32.mrb[6].mxu0 }
 0x25b   :  { %v2855_v6 = vadd.f32 %v2854_v1, %v2700_v0  ;;  %v2872_v7 = vrot.slane %v2825_v5, 4  ;;  %v2827_v8 = vpop.f32.mrb[6].mxu1  ;;  %v2705_v9 = vpop.f32.mrb[7].mxu0 }
 0x25c   :  { %v2867_v33 = vadd.f32 %v2866_v25, %v2823_v2  ;;  %v2861_v10 = vadd.f32 %v2860_v4, %v2702_v3  ;;  %v2828_v11 = vpop.f32.mrb[7].mxu1 }
 0x25d   :  { %v2856_v13 = vrot.slane %v2855_v6, 2  ;;  %v2873_v14 = vadd.f32 %v2872_v7, %v2825_v5 }
 0x25e   :  { %v2868_v15 = vrot.slane %v2867_v33, 2  ;;  %v2862_v16 = vrot.slane %v2861_v10, 2 }
 0x25f   :  { %v2857_v17 = vadd.f32 %v2856_v13, %v2855_v6  ;;  %v2874_v18 = vrot.slane %v2873_v14, 2 }
 0x260   :  { %v2869_v19 = vadd.f32 %v2868_v15, %v2867_v33  ;;  %v2863_v50 = vadd.f32 %v2862_v16, %v2861_v10 }
 0x261   :  { %v2858_v52 = vrot.slane %v2857_v17, 1  ;;  %v2875_v53 = vadd.f32 %v2874_v18, %v2873_v14 }
 0x262   :  { %v2870_v55 = vrot.slane %v2869_v19, 1  ;;  %v2864_v20 = vrot.slane %v2863_v50, 1 }
 0x263   :  { %v2859_v21 = vadd.f32 %v2858_v52, %v2857_v17  ;;  %v2876_v22 = vrot.slane %v2875_v53, 1 }
 0x264   :  { %v2871_v24 = vadd.f32 %v2870_v55, %v2869_v19  ;;  %v2865_v26 = vadd.f32 %v2864_v20, %v2863_v50 }
 0x265   :  { %v2883_v27 = vmul.f32 0.125, %v2859_v21  ;;  %v2877_v28 = vadd.f32 %v2876_v22, %v2875_v53 }
 0x266   :  { %v2885_v30 = vmul.f32 0.125, %v2871_v24  ;;  %v2884_v31 = vmul.f32 0.125, %v2865_v26  ;;  %v2960_v26 = vld [vmem:[%s6131_s2 + $0x8] sm:$0xff] }
 0x267   :  { %v6067_v34 = vsub.f32 %v2700_v0, %v2883_v27  ;;  %v2886_v35 = vmul.f32 0.125, %v2877_v28  ;;  %v3130_v28 = vrot.slane %v2960_v26, %v3113_v41 }
 0x268   :  { %v6069_v37 = vsub.f32 %v2823_v2, %v2885_v30  ;;  %v6071_v38 = vsub.f32 %v2702_v3, %v2884_v31  ;;  %v3138_v30 = vrot.slane %v2960_v26, %v3121_v42  ;;  %v3126_v31 = vrot.slane %v2960_v26, %v5929_v39 }
 0x269   :  { %v2899_v40 = vmul.f32 %v6067_v34, %v6067_v34  ;;  %v6075_v44 = vsub.f32 %v2825_v5, %v2886_v35  ;;  %v3134_v35 = vrot.slane %v2960_v26, %v3117_v43 }
 0x26a   :  { %v2901_v45 = vmul.f32 %v6069_v37, %v6069_v37  ;;  %v2900_v47 = vmul.f32 %v6071_v38, %v6071_v38  ;;  %v3178_v42 = vrot.slane %v3138_v30, %v5929_v39 }
 0x26b   :  { %v2927_v54 = vrot.slane %v2899_v40, 4  ;;  %v2902_v36 = vmul.f32 %v6075_v44, %v6075_v44  ;;  %v3174_v43 = vrot.slane %v3134_v35, %v5929_v39 }
 0x26c   :  { %v2939_v56 = vrot.slane %v2901_v45, 4  ;;  %v2933_v58 = vrot.slane %v2900_v47, 4 }
 0x26d   :  { %v2928_v59 = vadd.f32 %v2927_v54, %v2899_v40  ;;  %v2945_v60 = vrot.slane %v2902_v36, 4  ;;  %v3170_v54 = vrot.slane %v3130_v28, %v5929_v39 }
 0x26e   :  { %v2940_v61 = vadd.f32 %v2939_v56, %v2901_v45  ;;  %v2934_v57 = vadd.f32 %v2933_v58, %v2900_v47 }
 0x26f   :  { %v2929_v62 = vrot.slane %v2928_v59, 2  ;;  %v2946_v12 = vadd.f32 %v2945_v60, %v2902_v36  ;;  %v3166_v36 = vrot.slane %v3126_v31, %v5929_v39 }
 0x270   :  { %v2941_v63 = vrot.slane %v2940_v61, 2  ;;  %v2935_v0 = vrot.slane %v2934_v57, 2 }
 0x271   :  { %v2930_v1 = vadd.f32 %v2929_v62, %v2928_v59  ;;  %v2947_v2 = vrot.slane %v2946_v12, 2 }
 0x272   :  { %v2942_v3 = vadd.f32 %v2941_v63, %v2940_v61  ;;  %v2936_v25 = vadd.f32 %v2935_v0, %v2934_v57 }
 0x273   :  { %v2931_v4 = vrot.slane %v2930_v1, 1  ;;  %v2948_v5 = vadd.f32 %v2947_v2, %v2946_v12 }
 0x274   :  { %v2943_v23 = vrot.slane %v2942_v3, 1  ;;  %v2937_v6 = vrot.slane %v2936_v25, 1 }
 0x275   :  { %v2932_v7 = vadd.f32 %v2931_v4, %v2930_v1  ;;  %v2949_v8 = vrot.slane %v2948_v5, 1 }
 0x276   :  { %v2944_v9 = vadd.f32 %v2943_v23, %v2942_v3  ;;  %v2938_v33 = vadd.f32 %v2937_v6, %v2936_v25 }
 0x277   :  { %v2955_v10 = vmul.f32 0.125, %v2932_v7  ;;  %v2950_v11 = vadd.f32 %v2949_v8, %v2948_v5 }
 0x278   :  { %v2957_v13 = vmul.f32 0.125, %v2944_v9  ;;  %v2956_v14 = vmul.f32 0.125, %v2938_v33 }
 0x279   :  { %v2965_v15 = vadd.f32 1e-05, %v2955_v10  ;;  %v2958_v16 = vmul.f32 0.125, %v2950_v11 }
 0x27a   :  { %v2967_v17 = vadd.f32 1e-05, %v2957_v13  ;;  %v2966_v18 = vadd.f32 1e-05, %v2956_v14 }
 0x27b   :  { %4541 = vrsqrt.f32 %v2965_v15  ;;  %v2968_v19 = vadd.f32 1e-05, %v2958_v16 }
 0x27c   :  { %4543 = vrsqrt.f32 %v2967_v17 }
 0x27d   :  { %4545 = vrsqrt.f32 %v2966_v18 }
 0x27e   :  { %4547 = vrsqrt.f32 %v2968_v19 }
 0x285   :  { %v4542_v50 = vpop.eup %4541 }
 0x286   :  { %v4544_v52 = vpop.eup %4543 }
 0x287   :  { %v4546_v53 = vpop.eup %4545 }
 0x288   :  { %v4548_v55 = vpop.eup %4547  ;;  %v3002_v20 = vcombine.low %v4542_v50, %v4546_v53 }
 0x289   :  { %v3003_v21 = vcombine.low %v4544_v52, %v4548_v55 }
 0x28a   :  { %v3010_v22 = vrot.slane %v3002_v20, %v5926_v32 }
 0x28b   :  { %v3017_v24 = vrot.slane %v3003_v21, %v5926_v32 }
 0x28d   :  { %v3018_v27 = vcombine.low %v3010_v22, %v3017_v24 }
 0x28f   :  { %v3022_v40 = vmul.f32 %v3018_v27, %v2960_v26 }
 0x291   :  { %v3056_v32 = vrot.slane %v3022_v40, %v3039_v48  ;;  %v3048_v45 = vrot.slane %v3022_v40, %v3031_v49  ;;  %v3044_v47 = vrot.slane %v3022_v40, %v5940_v46  ;;  %v3052_v41 = vrot.slane %v3022_v40, %v3035_v51 }
 0x293   :  { %v3096_v56 = vrot.slane %v3056_v32, %v5940_v46  ;;  %v3088_v48 = vrot.slane %v3048_v45, %v5940_v46  ;;  %v3084_v58 = vrot.slane %v3044_v47, %v5940_v46  ;;  %v3092_v49 = vrot.slane %v3052_v41, %v5940_v46 }
 0x295   :  { %v3104_v59 = vmul.f32 %v3096_v56, %v6075_v44  ;;  %v3102_v29 = vmul.f32 %v3088_v48, %v6071_v38  ;;  %v3101_v51 = vmul.f32 %v3084_v58, %v6067_v34  ;;  %v3103_v60 = vmul.f32 %v3092_v49, %v6069_v37  ;;  %v4282_v37 = vld [vmem:[%s6133_s4] ss:$0 sm:$0xff]  ;;  %s4574_s4 = smov [#allocation2]  }
 0x296   :  { %s3890_s30 = sshll.u32 %s4574_s4, 4  ;;  %s3891_s30 = int_to_ptr.vmem [resolvable:$true] %s3890_s30 }
 0x297   :  { %v3184_v61 = vadd.f32 %v3170_v54, %v3102_v29  ;;  %v3186_v57 = vadd.f32 %v3178_v42, %v3104_v59  ;;  %v3183_v62 = vadd.f32 %v3166_v36, %v3101_v51  ;;  %v3185_v39 = vadd.f32 %v3174_v43, %v3103_v60  ;;  %s4549_s6 = scalar_lea.vmem %s3891_s30, 128  ;;  %p4554_p1 = scmp.lt.s32.totalorder %s3891_s30, %s3891_s30 }
 0x298   :  { %p4550_p0 = scmp.ne.s32.totalorder %s3891_s30, %s4549_s6  ;;  %p4555_p2 = scmp.lt.s32.totalorder %s4549_s6, %s4549_s6 }
 0x299   :  { %v3192_v12 = vmax.f32 %v3184_v61, 0.0  ;;  %v3194_v63 = vmax.f32 %v3186_v57, 0.0  ;;  %v3191_v0 = vmax.f32 %v3183_v62, 0.0  ;;  %v3193_v1 = vmax.f32 %v3185_v39, 0.0 }
 0x29a   :  { %p4556_p3 = por %p4555_p2, %p4554_p1 }
 0x29b   :  { %v3200_v2 = vpack.c.bf16 %v3192_v12, %v3192_v12  ;;  %v3202_v3 = vpack.c.bf16 %v3194_v63, %v3194_v63  ;;  %v3199_v25 = vpack.c.bf16 %v3191_v0, %v3191_v0  ;;  %v3201_v46 = vpack.c.bf16 %v3193_v1, %v3193_v1 }
 0x29c   :  { %p4557_p4 = pnand %p4556_p3, %p4550_p0 }
 0x29d   :  { %3834 = vmatprep.mubr.bf16.mxu0 %v3200_v2  ;;  %3874 = vmatprep.mubr.bf16.mxu1 %v3202_v3 }
 0x29e   :  { %3835 = vmatmul.mubr.bf16.vlgmr.msra.gmra.mrb[12].mxu0 %v3199_v25  ;;  %3875 = vmatmul.mubr.bf16.vlgmr.msra.gmra.mrb[12].mxu1 %v3201_v46 }
 0x2b1   :  { %v4363_v38 = vpop.f32.mrb[8].mxu0  ;;  %v4385_v34 = vpop.f32.mrb[8].mxu1 }
 0x2b2   :  { %v4364_v44 = vpop.f32.mrb[9].mxu0  ;;  %v4386_v4 = vpop.f32.mrb[9].mxu1 }
 0x2b3   :  { %v4365_v5 = vadd.f32 %v4364_v44, %v4363_v38  ;;  %v4387_v23 = vadd.f32 %v4386_v4, %v4385_v34  ;;  %v4366_v6 = vpop.f32.mrb[10].mxu0  ;;  %v4388_v7 = vpop.f32.mrb[10].mxu1 }
 0x2b4   :  { %v4367_v8 = vpop.f32.mrb[11].mxu0  ;;  %v4389_v9 = vpop.f32.mrb[11].mxu1 }
 0x2b5   :  { %v3757_v33 = vadd.f32 %v4365_v5, %v4282_v37 }
 0x2b7   :  { %v3797_v10 = vadd.f32 %v4387_v23, %v3757_v33 }
 0x371   :  { %v4407_v11 = vpop.f32.mrb[12].mxu0  ;;  %v4429_v13 = vpop.f32.mrb[12].mxu1 }
 0x372   :  { %v4408_v14 = vpop.f32.mrb[13].mxu0  ;;  %v4430_v15 = vpop.f32.mrb[13].mxu1 }
 0x373   :  { %v4409_v16 = vadd.f32 %v4408_v14, %v4407_v11  ;;  %v4431_v17 = vadd.f32 %v4430_v15, %v4429_v13  ;;  %v4410_v18 = vpop.f32.mrb[14].mxu0  ;;  %v4432_v19 = vpop.f32.mrb[14].mxu1 }
 0x374   :  { %v4411_v50 = vpop.f32.mrb[15].mxu0  ;;  %v4433_v52 = vpop.f32.mrb[15].mxu1 }
 0x375   :  { %v3837_v53 = vadd.f32 %v4409_v16, %v3797_v10 }
 0x377   :  { %v3877_v55 = vadd.f32 %v4431_v17, %v3837_v53 }
 0x379   :  { %3883 = vst.msk [vmem:[#allocation2] sm:$0xff] %vm3882_vm0, %v3877_v55 }
 0x37a   :  { %4560 = shalt.err (!%p4557_p4)
}
 0x37b   :  { %s4561_s9 = scalar_lea.hbm %s6134_s5, 128 }
 0x37c   :  { %p4562_p5 = scmp.ne.s32.totalorder %s6134_s5, %s4561_s9  ;;  %p4565_p6 = scmp.lt.u32.totalorder %s4561_s9, %s6134_s5 }
 0x37e   :  { %p4567_p7 = pnand %p4565_p6, %p4562_p5 }
 0x380   :  { %4570 = shalt.err (!%p4567_p7)
}
 0x381   :  { %3893 = dma.vmem_to_hbm [thread:$0]  %s3891_s30, 128, %s6134_s5, [#allocation3]  }
 0x382   :  { %4571 = dma.done.wait [#allocation3], 128  }
 0x383   :  { %4572 = vsyncadd [#allocation3], 4294967168 }
 0x384   :  { %3897 = vsyncpa [#allocation3], 1 }

</bundles_post_ra>
